<compile_context>
chip_gen: v7x
topology: tpu7x:2x2x1
jax: 0.10.0
libtpu: 0.0.40
codegen_flags: <defaults>
</compile_context>

<pallas_src>
import functools
import math

import jax
import jax.numpy as jnp
from jax.experimental import pallas as pl
from jax.experimental.pallas import tpu as pltpu


def _round_up(x, m):
    return ((x + m - 1) // m) * m


# ---------------------------------------------------------------------------
# Fused kernel: hoisted input projection + 2-layer GRU recurrence (time loop
# in-kernel, hidden states in VMEM scratch) + classifier head.
# ---------------------------------------------------------------------------
def _fused_rnn_kernel(
    len_ref,                              # (Bp, 1) int32  valid lengths
    x_ref,                                # (T*Bp, F)      time-major, flattened
    wih0_ref, whh0_ref, bih0_ref, bhh0_ref,
    wih1_ref, whh1_ref, bih1_ref, bhh1_ref,
    wclf_ref, bclf_ref,
    out_ref,                              # (Bp, Cp)       logits (padded)
    gi0_ref, h1_ref, h2_ref,              # VMEM scratch
    *, T, Bp, H,
):
    # ---- Hoisted layer-0 input projection: one big MXU pass over all steps.
    gi0_ref[...] = (
        jnp.dot(x_ref[...], wih0_ref[...], preferred_element_type=jnp.float32)
        + bih0_ref[...]
    )

    h1_ref[...] = jnp.zeros_like(h1_ref)
    h2_ref[...] = jnp.zeros_like(h2_ref)

    lengths = len_ref[...]                # (Bp, 1) int32

    def gru_cell(gi, h_prev, whh_ref, bhh_ref):
        gh = (
            jnp.dot(h_prev, whh_ref[...], preferred_element_type=jnp.float32)
            + bhh_ref[...]
        )
        i_r, i_z, i_n = gi[:, :H], gi[:, H:2 * H], gi[:, 2 * H:]
        h_r, h_z, h_n = gh[:, :H], gh[:, H:2 * H], gh[:, 2 * H:]
        r = jax.nn.sigmoid(i_r + h_r)
        z = jax.nn.sigmoid(i_z + h_z)
        n = jnp.tanh(i_n + r * h_n)       # b_hh_n already inside h_n (PyTorch)
        return (1.0 - z) * n + z * h_prev

    # ---- Serial recurrence over time, fully in VMEM.
    @pl.loop(0, T)
    def _(t):
        h1_prev = h1_ref[...]
        h2_prev = h2_ref[...]

        row = pl.multiple_of(t * Bp, Bp)
        gi0_t = gi0_ref[pl.ds(row, Bp), :]                     # (Bp, 3H)
        h1_new = gru_cell(gi0_t, h1_prev, whh0_ref, bhh0_ref)

        gi1_t = (
            jnp.dot(h1_new, wih1_ref[...], preferred_element_type=jnp.float32)
            + bih1_ref[...]
        )
        h2_new = gru_cell(gi1_t, h2_prev, whh1_ref, bhh1_ref)

        # pack_padded_sequence semantics: freeze states once t >= length, so at
        # loop end h2_ref holds h2 at t = length-1 for every sequence.
        valid = lengths > t                                    # (Bp, 1) bool
        h1_ref[...] = jnp.where(valid, h1_new, h1_prev)
        h2_ref[...] = jnp.where(valid, h2_new, h2_prev)

    # ---- Fused classifier on the last valid layer-2 hidden state.
    out_ref[...] = (
        jnp.dot(h2_ref[...], wclf_ref[...], preferred_element_type=jnp.float32)
        + bclf_ref[...]
    )


def _fused_rnn(len_arr, x_flat, w0i, w0h, b0i, b0h, w1i, w1h, b1i, b1h,
               wclf, bclf, *, T, Bp, F, H, Cp):
    const = lambda i: (0, 0)
    return pl.pallas_call(
        functools.partial(_fused_rnn_kernel, T=T, Bp=Bp, H=H),
        out_shape=jax.ShapeDtypeStruct((Bp, Cp), jnp.float32),
        grid_spec=pltpu.PrefetchScalarGridSpec(
            num_scalar_prefetch=0,
            grid=(1,),
            in_specs=[
                pl.BlockSpec((Bp, 1), const),          # lengths
                pl.BlockSpec((T * Bp, F), const),      # x (time-major, flat)
                pl.BlockSpec((F, 3 * H), const),       # W_ih_l0^T
                pl.BlockSpec((H, 3 * H), const),       # W_hh_l0^T
                pl.BlockSpec((1, 3 * H), const),       # b_ih_l0
                pl.BlockSpec((1, 3 * H), const),       # b_hh_l0
                pl.BlockSpec((H, 3 * H), const),       # W_ih_l1^T
                pl.BlockSpec((H, 3 * H), const),       # W_hh_l1^T
                pl.BlockSpec((1, 3 * H), const),       # b_ih_l1
                pl.BlockSpec((1, 3 * H), const),       # b_hh_l1
                pl.BlockSpec((H, Cp), const),          # W_clf^T (padded)
                pl.BlockSpec((1, Cp), const),          # b_clf   (padded)
            ],
            out_specs=pl.BlockSpec((Bp, Cp), const),
            scratch_shapes=[
                pltpu.VMEM((T * Bp, 3 * H), jnp.float32),   # precomputed gi0
                pltpu.VMEM((Bp, H), jnp.float32),           # h1
                pltpu.VMEM((Bp, H), jnp.float32),           # h2
            ],
        ),
        compiler_params=pltpu.CompilerParams(
            dimension_semantics=("arbitrary",),
        ),
    )(len_arr, x_flat, w0i, w0h, b0i, b0h, w1i, w1h, b1i, b1h, wclf, bclf)


# ---------------------------------------------------------------------------
# Parameter init (deterministic, PyTorch-style uniform(-1/sqrt(H), 1/sqrt(H)))
# ---------------------------------------------------------------------------
def init_params(key, in_size, hidden, n_classes):
    k = 1.0 / math.sqrt(hidden)
    keys = jax.random.split(key, 10)

    def u(kk, shape, bound):
        return jax.random.uniform(kk, shape, jnp.float32, -bound, bound)

    return {
        # layer 0
        "w_ih_l0": u(keys[0], (3 * hidden, in_size), k),
        "w_hh_l0": u(keys[1], (3 * hidden, hidden), k),
        "b_ih_l0": u(keys[2], (3 * hidden,), k),
        "b_hh_l0": u(keys[3], (3 * hidden,), k),
        # layer 1
        "w_ih_l1": u(keys[4], (3 * hidden, hidden), k),
        "w_hh_l1": u(keys[5], (3 * hidden, hidden), k),
        "b_ih_l1": u(keys[6], (3 * hidden,), k),
        "b_hh_l1": u(keys[7], (3 * hidden,), k),
        # classifier
        "w_clf": u(keys[8], (n_classes, hidden), k),
        "b_clf": u(keys[9], (n_classes,), k),
    }


# ---------------------------------------------------------------------------
# Forward pass (padding/layout glue in plain JAX, hot path in one Pallas call)
# ---------------------------------------------------------------------------
def rnn_forward(x_list, params):
    assert isinstance(x_list, list)
    lengths = [int(t.shape[0]) for t in x_list]
    B = len(x_list)
    T = max(lengths)
    F = x_list[0].shape[1]
    H = params["w_hh_l0"].shape[1]
    C = params["w_clf"].shape[0]

    Bp = _round_up(max(B, 1), 8)      # full sublane
    Cp = _round_up(max(C, 1), 128)    # lane-dense classifier output

    # pad_sequence (zeros at the end), transpose to time-major, pad batch.
    x_pad = jnp.zeros((T, Bp, F), jnp.float32)
    for i, xi in enumerate(x_list):
        x_pad = x_pad.at[: lengths[i], i, :].set(xi.astype(jnp.float32))
    x_flat = x_pad.reshape(T * Bp, F)

    len_arr = jnp.ones((Bp,), jnp.int32)
    len_arr = len_arr.at[:B].set(jnp.asarray(lengths, jnp.int32))
    len_arr = len_arr.reshape(Bp, 1)

    # Classifier weights padded on the class dim so the kernel's output store
    # is a full (8, 128) tile.
    w_clf_t = jnp.zeros((H, Cp), jnp.float32).at[:, :C].set(params["w_clf"].T)
    b_clf_p = jnp.zeros((1, Cp), jnp.float32).at[:, :C].set(params["b_clf"][None, :])

    out_padded = _fused_rnn(
        len_arr, x_flat,
        params["w_ih_l0"].T, params["w_hh_l0"].T,
        params["b_ih_l0"][None, :], params["b_hh_l0"][None, :],
        params["w_ih_l1"].T, params["w_hh_l1"].T,
        params["b_ih_l1"][None, :], params["b_hh_l1"][None, :],
        w_clf_t, b_clf_p,
        T=T, Bp=Bp, F=F, H=H, Cp=Cp,
    )
    return out_padded[:B, :C]                               # (B, n_classes)


# ---------------------------------------------------------------------------
# Pure-JAX reference for a sanity check
# ---------------------------------------------------------------------------
def _gru_layer_ref(x_tbf, w_ih, w_hh, b_ih, b_hh):
    _, B, _ = x_tbf.shape
    H = w_hh.shape[1]

    def step(h, x_t):
        gi = x_t @ w_ih.T + b_ih
        gh = h @ w_hh.T + b_hh
        i_r, i_z, i_n = jnp.split(gi, 3, axis=-1)
        h_r, h_z, h_n = jnp.split(gh, 3, axis=-1)
        r = jax.nn.sigmoid(i_r + h_r)
        z = jax.nn.sigmoid(i_z + h_z)
        n = jnp.tanh(i_n + r * h_n)
        h_new = (1.0 - z) * n + z * h
        return h_new, h_new

    h0 = jnp.zeros((B, H), jnp.float32)
    _, outs = jax.lax.scan(step, h0, x_tbf)
    return outs


def rnn_forward_ref(x_list, params):
    lengths = [int(t.shape[0]) for t in x_list]
    B = len(x_list)
    T = max(lengths)
    F = x_list[0].shape[1]
    x_pad = jnp.zeros((T, B, F), jnp.float32)
    for i, xi in enumerate(x_list):
        x_pad = x_pad.at[: lengths[i], i, :].set(xi.astype(jnp.float32))
    h1 = _gru_layer_ref(x_pad, params["w_ih_l0"], params["w_hh_l0"],
                        params["b_ih_l0"], params["b_hh_l0"])
    h2 = _gru_layer_ref(h1, params["w_ih_l1"], params["w_hh_l1"],
                        params["b_ih_l1"], params["b_hh_l1"])
    len_arr = jnp.asarray(lengths, jnp.int32)
    h_last = h2[len_arr - 1, jnp.arange(B), :]
    return h_last @ params["w_clf"].T + params["b_clf"]


if __name__ == "__main__":
    # Small, module-consistent shapes: variable-length sequences of feature
    # vectors, 2-layer GRU, linear head to n_classes logits.
    IN_SIZE = 256
    HIDDEN = 128
    N_CLASSES = 11
    LENGTHS = [8, 5]            # batch of 2 variable-length sequences

    key = jax.random.PRNGKey(0)
    pkey, *xkeys = jax.random.split(key, 1 + len(LENGTHS))

    params = init_params(pkey, IN_SIZE, HIDDEN, N_CLASSES)
    x_list = [
        jax.random.normal(xkeys[i], (LENGTHS[i], IN_SIZE), jnp.float32)
        for i in range(len(LENGTHS))
    ]

    out = rnn_forward(x_list, params)
    out = jax.block_until_ready(out)

    ref = jax.block_until_ready(rnn_forward_ref(x_list, params))
    assert out.shape == (len(LENGTHS), N_CLASSES)
    assert jnp.allclose(out, ref, rtol=1e-2, atol=1e-2), (out, ref)

    print("KERNEL_OK")
</pallas_src>

<mosaic_0001>
module attributes {stable_mosaic.version = 11 : i64} {
  func.func @_fused_rnn_kernel(%arg0: i32, %arg1: memref<8x1xi32, #tpu.memory_space<vmem>>, %arg2: memref<64x256xf32, #tpu.memory_space<vmem>>, %arg3: memref<256x384xf32, #tpu.memory_space<vmem>>, %arg4: memref<128x384xf32, #tpu.memory_space<vmem>>, %arg5: memref<1x384xf32, #tpu.memory_space<vmem>>, %arg6: memref<1x384xf32, #tpu.memory_space<vmem>>, %arg7: memref<128x384xf32, #tpu.memory_space<vmem>>, %arg8: memref<128x384xf32, #tpu.memory_space<vmem>>, %arg9: memref<1x384xf32, #tpu.memory_space<vmem>>, %arg10: memref<1x384xf32, #tpu.memory_space<vmem>>, %arg11: memref<128x128xf32, #tpu.memory_space<vmem>>, %arg12: memref<1x128xf32, #tpu.memory_space<vmem>>, %arg13: memref<8x128xf32, #tpu.memory_space<vmem>>, %arg14: memref<64x384xf32, #tpu.memory_space<vmem>>, %arg15: memref<8x128xf32, #tpu.memory_space<vmem>>, %arg16: memref<8x128xf32, #tpu.memory_space<vmem>>) attributes {dimension_semantics = [#tpu.dimension_semantics<arbitrary>], iteration_bounds = array<i64: 1>, scalar_prefetch = 0 : i64, scratch_operands = 3 : i64, tpu.core_type = #tpu.core_type<tc>, window_params = [{pipeline_mode = #tpu.pipeline_mode<synchronous>, transform_indices = @transform_0, window_bounds = array<i64: 8, 1>}, {pipeline_mode = #tpu.pipeline_mode<synchronous>, transform_indices = @transform_1, window_bounds = array<i64: 64, 256>}, {pipeline_mode = #tpu.pipeline_mode<synchronous>, transform_indices = @transform_2, window_bounds = array<i64: 256, 384>}, {pipeline_mode = #tpu.pipeline_mode<synchronous>, transform_indices = @transform_3, window_bounds = array<i64: 128, 384>}, {pipeline_mode = #tpu.pipeline_mode<synchronous>, transform_indices = @transform_4, window_bounds = array<i64: 1, 384>}, {pipeline_mode = #tpu.pipeline_mode<synchronous>, transform_indices = @transform_5, window_bounds = array<i64: 1, 384>}, {pipeline_mode = #tpu.pipeline_mode<synchronous>, transform_indices = @transform_6, window_bounds = array<i64: 128, 384>}, {pipeline_mode = #tpu.pipeline_mode<synchronous>, transform_indices = @transform_7, window_bounds = array<i64: 128, 384>}, {pipeline_mode = #tpu.pipeline_mode<synchronous>, transform_indices = @transform_8, window_bounds = array<i64: 1, 384>}, {pipeline_mode = #tpu.pipeline_mode<synchronous>, transform_indices = @transform_9, window_bounds = array<i64: 1, 384>}, {pipeline_mode = #tpu.pipeline_mode<synchronous>, transform_indices = @transform_10, window_bounds = array<i64: 128, 128>}, {pipeline_mode = #tpu.pipeline_mode<synchronous>, transform_indices = @transform_11, window_bounds = array<i64: 1, 128>}, {pipeline_mode = #tpu.pipeline_mode<synchronous>, transform_indices = @transform_12, window_bounds = array<i64: 8, 128>}]} {
    %c0 = arith.constant 0 : index
    %c0_0 = arith.constant 0 : index
    %0 = vector.load %arg2[%c0, %c0_0] : memref<64x256xf32, #tpu.memory_space<vmem>>, vector<64x256xf32>
    %c0_1 = arith.constant 0 : index
    %c0_2 = arith.constant 0 : index
    %1 = vector.load %arg3[%c0_1, %c0_2] : memref<256x384xf32, #tpu.memory_space<vmem>>, vector<256x384xf32>
    %cst = arith.constant dense<0.000000e+00> : vector<64x384xf32>
    %2 = tpu.matmul %0, %1, %cst {dimension_numbers = #tpu.dot_dimension_numbers<[1], [0], [0], [1], [0, 0, 1, 1], [], []>} : vector<64x256xf32>, vector<256x384xf32>, vector<64x384xf32> -> vector<64x384xf32>
    %c0_3 = arith.constant 0 : index
    %c0_4 = arith.constant 0 : index
    %3 = vector.load %arg5[%c0_3, %c0_4] : memref<1x384xf32, #tpu.memory_space<vmem>>, vector<1x384xf32>
    %4 = vector.broadcast %3 : vector<1x384xf32> to vector<64x384xf32>
    %5 = arith.addf %2, %4 : vector<64x384xf32>
    %c0_5 = arith.constant 0 : index
    %c0_6 = arith.constant 0 : index
    %6 = vector.load %arg14[%c0_5, %c0_6] : memref<64x384xf32, #tpu.memory_space<vmem>>, vector<64x384xf32>
    tpu.vector_store %arg14[%c0_5, %c0_6], %5 {strides = array<i32>} : memref<64x384xf32, #tpu.memory_space<vmem>>, vector<64x384xf32>,
    %cst_7 = arith.constant 0.000000e+00 : f32
    %7 = vector.broadcast %cst_7 : f32 to vector<8x128xf32>
    %c0_8 = arith.constant 0 : index
    %c0_9 = arith.constant 0 : index
    %8 = vector.load %arg15[%c0_8, %c0_9] : memref<8x128xf32, #tpu.memory_space<vmem>>, vector<8x128xf32>
    tpu.vector_store %arg15[%c0_8, %c0_9], %7 {strides = array<i32>} : memref<8x128xf32, #tpu.memory_space<vmem>>, vector<8x128xf32>,
    %cst_10 = arith.constant 0.000000e+00 : f32
    %9 = vector.broadcast %cst_10 : f32 to vector<8x128xf32>
    %c0_11 = arith.constant 0 : index
    %c0_12 = arith.constant 0 : index
    %10 = vector.load %arg16[%c0_11, %c0_12] : memref<8x128xf32, #tpu.memory_space<vmem>>, vector<8x128xf32>
    tpu.vector_store %arg16[%c0_11, %c0_12], %9 {strides = array<i32>} : memref<8x128xf32, #tpu.memory_space<vmem>>, vector<8x128xf32>,
    %c0_13 = arith.constant 0 : index
    %c0_14 = arith.constant 0 : index
    %11 = vector.load %arg1[%c0_13, %c0_14] : memref<8x1xi32, #tpu.memory_space<vmem>>, vector<8x1xi32>
    %c0_i32 = arith.constant 0 : i32
    %c8_i32 = arith.constant 8 : i32
    %12 = arith.addi %c0_i32, %c8_i32 : i32
    %c1_i32 = arith.constant 1 : i32
    scf.for %arg17 = %c0_i32 to %12 step %c1_i32  : i32 {
      %c1_i32_25 = arith.constant 1 : i32
      %20 = arith.muli %arg17, %c1_i32_25 : i32
      %c0_i32_26 = arith.constant 0 : i32
      %21 = arith.addi %c0_i32_26, %20 : i32
      %c0_27 = arith.constant 0 : index
      %c0_28 = arith.constant 0 : index
      %22 = vector.load %arg15[%c0_27, %c0_28] : memref<8x128xf32, #tpu.memory_space<vmem>>, vector<8x128xf32>
      %c0_29 = arith.constant 0 : index
      %c0_30 = arith.constant 0 : index
      %23 = vector.load %arg16[%c0_29, %c0_30] : memref<8x128xf32, #tpu.memory_space<vmem>>, vector<8x128xf32>
      %c8_i32_31 = arith.constant 8 : i32
      %24 = arith.muli %21, %c8_i32_31 : i32
      %25 = tpu.assume_multiple %24, 8 : i32
      %26 = arith.index_cast %25 : i32 to index
      %c0_32 = arith.constant 0 : index
      %27 = vector.load %arg14[%26, %c0_32] : memref<64x384xf32, #tpu.memory_space<vmem>>, vector<8x384xf32>
      %c0_33 = arith.constant 0 : index
      %c0_34 = arith.constant 0 : index
      %28 = vector.load %arg4[%c0_33, %c0_34] : memref<128x384xf32, #tpu.memory_space<vmem>>, vector<128x384xf32>
      %cst_35 = arith.constant dense<0.000000e+00> : vector<8x384xf32>
      %29 = tpu.matmul %22, %28, %cst_35 {dimension_numbers = #tpu.dot_dimension_numbers<[1], [0], [0], [1], [0, 0, 1, 1], [], []>} : vector<8x128xf32>, vector<128x384xf32>, vector<8x384xf32> -> vector<8x384xf32>
      %c0_36 = arith.constant 0 : index
      %c0_37 = arith.constant 0 : index
      %30 = vector.load %arg6[%c0_36, %c0_37] : memref<1x384xf32, #tpu.memory_space<vmem>>, vector<1x384xf32>
      %31 = vector.broadcast %30 : vector<1x384xf32> to vector<8x384xf32>
      %32 = arith.addf %29, %31 : vector<8x384xf32>
      %33 = vector.extract_strided_slice %27 {offsets = [0, 0], sizes = [8, 128], strides = [1, 1]} : vector<8x384xf32> to vector<8x128xf32>
      %34 = vector.extract_strided_slice %27 {offsets = [0, 128], sizes = [8, 128], strides = [1, 1]} : vector<8x384xf32> to vector<8x128xf32>
      %35 = vector.extract_strided_slice %27 {offsets = [0, 256], sizes = [8, 128], strides = [1, 1]} : vector<8x384xf32> to vector<8x128xf32>
      %36 = vector.extract_strided_slice %32 {offsets = [0, 0], sizes = [8, 128], strides = [1, 1]} : vector<8x384xf32> to vector<8x128xf32>
      %37 = vector.extract_strided_slice %32 {offsets = [0, 128], sizes = [8, 128], strides = [1, 1]} : vector<8x384xf32> to vector<8x128xf32>
      %38 = vector.extract_strided_slice %32 {offsets = [0, 256], sizes = [8, 128], strides = [1, 1]} : vector<8x384xf32> to vector<8x128xf32>
      %39 = arith.addf %33, %36 : vector<8x128xf32>
      %40 = arith.negf %39 : vector<8x128xf32>
      %41 = math.exp %40 : vector<8x128xf32>
      %cst_38 = arith.constant 1.000000e+00 : f32
      %42 = vector.broadcast %cst_38 : f32 to vector<8x128xf32>
      %43 = arith.addf %42, %41 : vector<8x128xf32>
      %44 = arith.divf %42, %43 : vector<8x128xf32>
      %45 = arith.addf %34, %37 : vector<8x128xf32>
      %46 = arith.negf %45 : vector<8x128xf32>
      %47 = math.exp %46 : vector<8x128xf32>
      %cst_39 = arith.constant 1.000000e+00 : f32
      %48 = vector.broadcast %cst_39 : f32 to vector<8x128xf32>
      %49 = arith.addf %48, %47 : vector<8x128xf32>
      %50 = arith.divf %48, %49 : vector<8x128xf32>
      %51 = arith.mulf %44, %38 : vector<8x128xf32>
      %52 = arith.addf %35, %51 : vector<8x128xf32>
      %53 = math.tanh %52 : vector<8x128xf32>
      %cst_40 = arith.constant 1.000000e+00 : f32
      %54 = vector.broadcast %cst_40 : f32 to vector<8x128xf32>
      %55 = arith.subf %54, %50 : vector<8x128xf32>
      %56 = arith.mulf %55, %53 : vector<8x128xf32>
      %57 = arith.mulf %50, %22 : vector<8x128xf32>
      %58 = arith.addf %56, %57 : vector<8x128xf32>
      %c0_41 = arith.constant 0 : index
      %c0_42 = arith.constant 0 : index
      %59 = vector.load %arg7[%c0_41, %c0_42] : memref<128x384xf32, #tpu.memory_space<vmem>>, vector<128x384xf32>
      %cst_43 = arith.constant dense<0.000000e+00> : vector<8x384xf32>
      %60 = tpu.matmul %58, %59, %cst_43 {dimension_numbers = #tpu.dot_dimension_numbers<[1], [0], [0], [1], [0, 0, 1, 1], [], []>} : vector<8x128xf32>, vector<128x384xf32>, vector<8x384xf32> -> vector<8x384xf32>
      %c0_44 = arith.constant 0 : index
      %c0_45 = arith.constant 0 : index
      %61 = vector.load %arg9[%c0_44, %c0_45] : memref<1x384xf32, #tpu.memory_space<vmem>>, vector<1x384xf32>
      %62 = vector.broadcast %61 : vector<1x384xf32> to vector<8x384xf32>
      %63 = arith.addf %60, %62 : vector<8x384xf32>
      %c0_46 = arith.constant 0 : index
      %c0_47 = arith.constant 0 : index
      %64 = vector.load %arg8[%c0_46, %c0_47] : memref<128x384xf32, #tpu.memory_space<vmem>>, vector<128x384xf32>
      %cst_48 = arith.constant dense<0.000000e+00> : vector<8x384xf32>
      %65 = tpu.matmul %23, %64, %cst_48 {dimension_numbers = #tpu.dot_dimension_numbers<[1], [0], [0], [1], [0, 0, 1, 1], [], []>} : vector<8x128xf32>, vector<128x384xf32>, vector<8x384xf32> -> vector<8x384xf32>
      %c0_49 = arith.constant 0 : index
      %c0_50 = arith.constant 0 : index
      %66 = vector.load %arg10[%c0_49, %c0_50] : memref<1x384xf32, #tpu.memory_space<vmem>>, vector<1x384xf32>
      %67 = vector.broadcast %66 : vector<1x384xf32> to vector<8x384xf32>
      %68 = arith.addf %65, %67 : vector<8x384xf32>
      %69 = vector.extract_strided_slice %63 {offsets = [0, 0], sizes = [8, 128], strides = [1, 1]} : vector<8x384xf32> to vector<8x128xf32>
      %70 = vector.extract_strided_slice %63 {offsets = [0, 128], sizes = [8, 128], strides = [1, 1]} : vector<8x384xf32> to vector<8x128xf32>
      %71 = vector.extract_strided_slice %63 {offsets = [0, 256], sizes = [8, 128], strides = [1, 1]} : vector<8x384xf32> to vector<8x128xf32>
      %72 = vector.extract_strided_slice %68 {offsets = [0, 0], sizes = [8, 128], strides = [1, 1]} : vector<8x384xf32> to vector<8x128xf32>
      %73 = vector.extract_strided_slice %68 {offsets = [0, 128], sizes = [8, 128], strides = [1, 1]} : vector<8x384xf32> to vector<8x128xf32>
      %74 = vector.extract_strided_slice %68 {offsets = [0, 256], sizes = [8, 128], strides = [1, 1]} : vector<8x384xf32> to vector<8x128xf32>
      %75 = arith.addf %69, %72 : vector<8x128xf32>
      %76 = arith.negf %75 : vector<8x128xf32>
      %77 = math.exp %76 : vector<8x128xf32>
      %cst_51 = arith.constant 1.000000e+00 : f32
      %78 = vector.broadcast %cst_51 : f32 to vector<8x128xf32>
      %79 = arith.addf %78, %77 : vector<8x128xf32>
      %80 = arith.divf %78, %79 : vector<8x128xf32>
      %81 = arith.addf %70, %73 : vector<8x128xf32>
      %82 = arith.negf %81 : vector<8x128xf32>
      %83 = math.exp %82 : vector<8x128xf32>
      %cst_52 = arith.constant 1.000000e+00 : f32
      %84 = vector.broadcast %cst_52 : f32 to vector<8x128xf32>
      %85 = arith.addf %84, %83 : vector<8x128xf32>
      %86 = arith.divf %84, %85 : vector<8x128xf32>
      %87 = arith.mulf %80, %74 : vector<8x128xf32>
      %88 = arith.addf %71, %87 : vector<8x128xf32>
      %89 = math.tanh %88 : vector<8x128xf32>
      %cst_53 = arith.constant 1.000000e+00 : f32
      %90 = vector.broadcast %cst_53 : f32 to vector<8x128xf32>
      %91 = arith.subf %90, %86 : vector<8x128xf32>
      %92 = arith.mulf %91, %89 : vector<8x128xf32>
      %93 = arith.mulf %86, %23 : vector<8x128xf32>
      %94 = arith.addf %92, %93 : vector<8x128xf32>
      %95 = vector.broadcast %21 : i32 to vector<8x1xi32>
      %96 = arith.cmpi sgt, %11, %95 : vector<8x1xi32>
      %97 = vector.shape_cast %96 : vector<8x1xi1> to vector<8x1xi1>
      %98 = vector.broadcast %97 : vector<8x1xi1> to vector<8x128xi1>
      %99 = arith.select %98, %58, %22 : vector<8x128xi1>, vector<8x128xf32>
      %c0_54 = arith.constant 0 : index
      %c0_55 = arith.constant 0 : index
      %100 = vector.load %arg15[%c0_54, %c0_55] : memref<8x128xf32, #tpu.memory_space<vmem>>, vector<8x128xf32>
      tpu.vector_store %arg15[%c0_54, %c0_55], %99 {strides = array<i32>} : memref<8x128xf32, #tpu.memory_space<vmem>>, vector<8x128xf32>,
      %101 = vector.shape_cast %96 : vector<8x1xi1> to vector<8x1xi1>
      %102 = vector.broadcast %101 : vector<8x1xi1> to vector<8x128xi1>
      %103 = arith.select %102, %94, %23 : vector<8x128xi1>, vector<8x128xf32>
      %c0_56 = arith.constant 0 : index
      %c0_57 = arith.constant 0 : index
      %104 = vector.load %arg16[%c0_56, %c0_57] : memref<8x128xf32, #tpu.memory_space<vmem>>, vector<8x128xf32>
      tpu.vector_store %arg16[%c0_56, %c0_57], %103 {strides = array<i32>} : memref<8x128xf32, #tpu.memory_space<vmem>>, vector<8x128xf32>,
    }
    %c8_i32_15 = arith.constant 8 : i32
    %c0_16 = arith.constant 0 : index
    %c0_17 = arith.constant 0 : index
    %13 = vector.load %arg16[%c0_16, %c0_17] : memref<8x128xf32, #tpu.memory_space<vmem>>, vector<8x128xf32>
    %c0_18 = arith.constant 0 : index
    %c0_19 = arith.constant 0 : index
    %14 = vector.load %arg11[%c0_18, %c0_19] : memref<128x128xf32, #tpu.memory_space<vmem>>, vector<128x128xf32>
    %cst_20 = arith.constant dense<0.000000e+00> : vector<8x128xf32>
    %15 = tpu.matmul %13, %14, %cst_20 {dimension_numbers = #tpu.dot_dimension_numbers<[1], [0], [0], [1], [0, 0, 1, 1], [], []>} : vector<8x128xf32>, vector<128x128xf32>, vector<8x128xf32> -> vector<8x128xf32>
    %c0_21 = arith.constant 0 : index
    %c0_22 = arith.constant 0 : index
    %16 = vector.load %arg12[%c0_21, %c0_22] : memref<1x128xf32, #tpu.memory_space<vmem>>, vector<1x128xf32>
    %17 = vector.broadcast %16 : vector<1x128xf32> to vector<8x128xf32>
    %18 = arith.addf %15, %17 : vector<8x128xf32>
    %c0_23 = arith.constant 0 : index
    %c0_24 = arith.constant 0 : index
    %19 = vector.load %arg13[%c0_23, %c0_24] : memref<8x128xf32, #tpu.memory_space<vmem>>, vector<8x128xf32>
    tpu.vector_store %arg13[%c0_23, %c0_24], %18 {strides = array<i32>} : memref<8x128xf32, #tpu.memory_space<vmem>>, vector<8x128xf32>,
    return
  }
  func.func @transform_0(%arg0: i32) -> (i32, i32) {
    %c0_i32 = arith.constant 0 : i32
    %c0_i32_0 = arith.constant 0 : i32
    %c0_i32_1 = arith.constant 0 : i32
    return %c0_i32, %c0_i32_0 : i32, i32
  }
  func.func @transform_1(%arg0: i32) -> (i32, i32) {
    %c0_i32 = arith.constant 0 : i32
    %c0_i32_0 = arith.constant 0 : i32
    %c0_i32_1 = arith.constant 0 : i32
    return %c0_i32, %c0_i32_0 : i32, i32
  }
  func.func @transform_2(%arg0: i32) -> (i32, i32) {
    %c0_i32 = arith.constant 0 : i32
    %c0_i32_0 = arith.constant 0 : i32
    %c0_i32_1 = arith.constant 0 : i32
    return %c0_i32, %c0_i32_0 : i32, i32
  }
  func.func @transform_3(%arg0: i32) -> (i32, i32) {
    %c0_i32 = arith.constant 0 : i32
    %c0_i32_0 = arith.constant 0 : i32
    %c0_i32_1 = arith.constant 0 : i32
    return %c0_i32, %c0_i32_0 : i32, i32
  }
  func.func @transform_4(%arg0: i32) -> (i32, i32) {
    %c0_i32 = arith.constant 0 : i32
    %c0_i32_0 = arith.constant 0 : i32
    %c0_i32_1 = arith.constant 0 : i32
    return %c0_i32, %c0_i32_0 : i32, i32
  }
  func.func @transform_5(%arg0: i32) -> (i32, i32) {
    %c0_i32 = arith.constant 0 : i32
    %c0_i32_0 = arith.constant 0 : i32
    %c0_i32_1 = arith.constant 0 : i32
    return %c0_i32, %c0_i32_0 : i32, i32
  }
  func.func @transform_6(%arg0: i32) -> (i32, i32) {
    %c0_i32 = arith.constant 0 : i32
    %c0_i32_0 = arith.constant 0 : i32
    %c0_i32_1 = arith.constant 0 : i32
    return %c0_i32, %c0_i32_0 : i32, i32
  }
  func.func @transform_7(%arg0: i32) -> (i32, i32) {
    %c0_i32 = arith.constant 0 : i32
    %c0_i32_0 = arith.constant 0 : i32
    %c0_i32_1 = arith.constant 0 : i32
    return %c0_i32, %c0_i32_0 : i32, i32
  }
  func.func @transform_8(%arg0: i32) -> (i32, i32) {
    %c0_i32 = arith.constant 0 : i32
    %c0_i32_0 = arith.constant 0 : i32
    %c0_i32_1 = arith.constant 0 : i32
    return %c0_i32, %c0_i32_0 : i32, i32
  }
  func.func @transform_9(%arg0: i32) -> (i32, i32) {
    %c0_i32 = arith.constant 0 : i32
    %c0_i32_0 = arith.constant 0 : i32
    %c0_i32_1 = arith.constant 0 : i32
    return %c0_i32, %c0_i32_0 : i32, i32
  }
  func.func @transform_10(%arg0: i32) -> (i32, i32) {
    %c0_i32 = arith.constant 0 : i32
    %c0_i32_0 = arith.constant 0 : i32
    %c0_i32_1 = arith.constant 0 : i32
    return %c0_i32, %c0_i32_0 : i32, i32
  }
  func.func @transform_11(%arg0: i32) -> (i32, i32) {
    %c0_i32 = arith.constant 0 : i32
    %c0_i32_0 = arith.constant 0 : i32
    %c0_i32_1 = arith.constant 0 : i32
    return %c0_i32, %c0_i32_0 : i32, i32
  }
  func.func @transform_12(%arg0: i32) -> (i32, i32) {
    %c0_i32 = arith.constant 0 : i32
    %c0_i32_0 = arith.constant 0 : i32
    %c0_i32_1 = arith.constant 0 : i32
    return %c0_i32, %c0_i32_0 : i32, i32
  }
}

</mosaic_0001>

<bundles_post_ra>
// kernel: tpu_custom_call.1
= control target key start
LH: loop header
LB: loop body
LE: loop exit
PB: predicated region body
PF: predicated region fallthrough
CT: control target
= control target key end

     0   :  { %17 = vsyncpa [#allocation6], 0  ;;  %s2392_s0 = inlined_call_operand.vmem [shape: s32[8,1], index: 0, kind: input, shape index: {}]   ;;  %s2393_s1 = inlined_call_operand.hbm [shape: f32[64,256], index: 1, kind: input, shape index: {}]   ;;  %s2394_s2 = inlined_call_operand.hbm [shape: f32[256,384], index: 2, kind: input, shape index: {}]   ;;  %s2395_s3 = inlined_call_operand.hbm [shape: f32[128,384], index: 3, kind: input, shape index: {}]   ;;  %s2396_s4 = inlined_call_operand.vmem [shape: f32[1,384], index: 4, kind: input, shape index: {}]   ;;  %s2397_s5 = inlined_call_operand.vmem [shape: f32[1,384], index: 5, kind: input, shape index: {}]   ;;  %s2398_s6 = inlined_call_operand.hbm [shape: f32[128,384], index: 6, kind: input, shape index: {}]   ;;  %s2399_s7 = inlined_call_operand.hbm [shape: f32[128,384], index: 7, kind: input, shape index: {}]   ;;  %s2400_s8 = inlined_call_operand.vmem [shape: f32[1,384], index: 8, kind: input, shape index: {}]   ;;  %s2401_s9 = inlined_call_operand.vmem [shape: f32[1,384], index: 9, kind: input, shape index: {}]   ;;  %s2402_s10 = inlined_call_operand.hbm [shape: f32[128,128], index: 10, kind: input, shape index: {}]   ;;  %s2403_s11 = inlined_call_operand.vmem [shape: f32[1,128], index: 11, kind: input, shape index: {}]   ;;  %s2404_s12 = inlined_call_operand.hbm [shape: f32[8,128], index: 12, kind: output, shape index: {}]  }
   0x1   :  { %18 = vsyncpa [#allocation9], 0 }
   0x2   :  { %19 = vsyncpa [#allocation12], 0 }
   0x3   :  { %20 = vsyncpa [#allocation15], 0 }
   0x4   :  { %21 = vsyncpa [#allocation7], 0  ;;  %s2093_s21 = smov [#allocation8]   ;;  %s1921_s25 = scalar_lea.hbm %s2394_s2, 12288 }
   0x5   :  { %s41_s22 = sshll.u32 %s2093_s21, 4  ;;  %p1922_p0 = scmp.ne.s32.totalorder %s2394_s2, %s1921_s25  ;;  %s42_s22 = int_to_ptr.vmem [resolvable:$true] %s41_s22 }
   0x6   :  { %p1925_p1 = scmp.lt.u32.totalorder %s1921_s25, %s2394_s2 }
   0x8   :  { %p1927_p2 = pnand %p1925_p1, %p1922_p0 }
   0xa   :  { %1930 = shalt.err (!%p1927_p2)
}
   0xb   :  { %s1931_s30 = scalar_lea.vmem %s42_s22, 12288  ;;  %p1936_p4 = scmp.lt.s32.totalorder %s42_s22, %s42_s22 }
   0xc   :  { %p1932_p3 = scmp.ne.s32.totalorder %s42_s22, %s1931_s30  ;;  %p1937_p5 = scmp.lt.s32.totalorder %s1931_s30, %s1931_s30 }
   0xe   :  { %p1938_p6 = por %p1937_p5, %p1936_p4 }
  0x10   :  { %p1939_p7 = pnand %p1938_p6, %p1932_p3 }
  0x12   :  { %1942 = shalt.err (!%p1939_p7)
}
  0x13   :  { %s2094_s13 = smov 384   ;;  %s2095_s14 = smov 24  }
  0x14   :  { %47 = dma.hbm_to_vmem [thread:$0]  %s2394_s2, 12288, %s42_s22, [#allocation9], %s2094_s13, %s2094_s13, %s2095_s14  }
  0x15   :  { %s2096_s17 = smov [#allocation11]   ;;  %s2097_s19 = smov [#allocation5]  }
  0x16   :  { %s69_s18 = sshll.u32 %s2096_s17, 4  ;;  %s29_s20 = sshll.u32 %s2097_s19, 4  ;;  %s70_s18 = int_to_ptr.vmem [resolvable:$true] %s69_s18  ;;  %s30_s20 = int_to_ptr.vmem [resolvable:$true] %s29_s20 }
  0x17   :  { %s1943_s24 = scalar_lea.hbm %s2398_s6, 6144 }
  0x18   :  { %p1944_p8 = scmp.ne.s32.totalorder %s2398_s6, %s1943_s24  ;;  %p1947_p9 = scmp.lt.u32.totalorder %s1943_s24, %s2398_s6 }
  0x1a   :  { %p1949_p10 = pnand %p1947_p9, %p1944_p8 }
  0x1c   :  { %1952 = shalt.err (!%p1949_p10)
}
  0x1d   :  { %s1953_s2 = scalar_lea.vmem %s70_s18, 6144  ;;  %p1958_p12 = scmp.lt.s32.totalorder %s70_s18, %s70_s18 }
  0x1e   :  { %p1954_p11 = scmp.ne.s32.totalorder %s70_s18, %s1953_s2  ;;  %p1959_p13 = scmp.lt.s32.totalorder %s1953_s2, %s1953_s2 }
  0x20   :  { %p1960_p0 = por %p1959_p13, %p1958_p12 }
  0x22   :  { %p1961_p1 = pnand %p1960_p0, %p1954_p11 }
  0x24   :  { %1964 = shalt.err (!%p1961_p1)
}
  0x25   :  { %75 = dma.hbm_to_vmem [thread:$0]  %s2398_s6, 6144, %s70_s18, [#allocation12], %s2094_s13, %s2094_s13, %s2095_s14  }
  0x26   :  { %s1965_s16 = scalar_lea.hbm %s2393_s1, 2048 }
  0x27   :  { %p1966_p2 = scmp.ne.s32.totalorder %s2393_s1, %s1965_s16  ;;  %p1969_p3 = scmp.lt.u32.totalorder %s1965_s16, %s2393_s1 }
  0x29   :  { %p1971_p4 = pnand %p1969_p3, %p1966_p2 }
  0x2b   :  { %1974 = shalt.err (!%p1971_p4)
}
  0x2c   :  { %s1975_s24 = scalar_lea.vmem %s30_s20, 2048  ;;  %p1980_p6 = scmp.lt.s32.totalorder %s30_s20, %s30_s20 }
  0x2d   :  { %p1976_p5 = scmp.ne.s32.totalorder %s30_s20, %s1975_s24  ;;  %p1981_p7 = scmp.lt.s32.totalorder %s1975_s24, %s1975_s24 }
  0x2f   :  { %p1982_p8 = por %p1981_p7, %p1980_p6 }
  0x31   :  { %p1983_p9 = pnand %p1982_p8, %p1976_p5 }
  0x33   :  { %1986 = shalt.err (!%p1983_p9)
}
  0x34   :  { %s2098_s6 = smov 256   ;;  %s2099_s18 = smov 16  }
  0x35   :  { %35 = dma.hbm_to_vmem [thread:$0]  %s2393_s1, 2048, %s30_s20, [#allocation6], %s2098_s6, %s2098_s6, %s2099_s18  }
  0x36   :  { %s2100_s27 = smov [#allocation10]   ;;  %s2101_s2 = smov [#allocation13]  }
  0x37   :  { %s53_s28 = sshll.u32 %s2100_s27, 4  ;;  %s81_s22 = sshll.u32 %s2101_s2, 4  ;;  %s54_s28 = int_to_ptr.vmem [resolvable:$true] %s53_s28  ;;  %s82_s22 = int_to_ptr.vmem [resolvable:$true] %s81_s22 }
  0x38   :  { %s1987_s15 = scalar_lea.hbm %s2395_s3, 6144 }
  0x39   :  { %p1988_p10 = scmp.ne.s32.totalorder %s2395_s3, %s1987_s15  ;;  %p1991_p11 = scmp.lt.u32.totalorder %s1987_s15, %s2395_s3 }
  0x3b   :  { %p1993_p12 = pnand %p1991_p11, %p1988_p10 }
  0x3d   :  { %1996 = shalt.err (!%p1993_p12)
}
  0x3e   :  { %s1997_s1 = scalar_lea.vmem %s54_s28, 6144  ;;  %p2002_p0 = scmp.lt.s32.totalorder %s54_s28, %s54_s28 }
  0x3f   :  { %p1998_p13 = scmp.ne.s32.totalorder %s54_s28, %s1997_s1  ;;  %p2003_p1 = scmp.lt.s32.totalorder %s1997_s1, %s1997_s1 }
  0x41   :  { %p2004_p2 = por %p2003_p1, %p2002_p0 }
  0x43   :  { %p2005_p3 = pnand %p2004_p2, %p1998_p13 }
  0x45   :  { %2008 = shalt.err (!%p2005_p3)
}
  0x46   :  { %59 = dma.hbm_to_vmem [thread:$0]  %s2395_s3, 6144, %s54_s28, [#allocation9], %s2094_s13, %s2094_s13, %s2095_s14  }
  0x47   :  { %s2009_s18 = scalar_lea.hbm %s2399_s7, 6144 }
  0x48   :  { %p2010_p4 = scmp.ne.s32.totalorder %s2399_s7, %s2009_s18  ;;  %p2013_p5 = scmp.lt.u32.totalorder %s2009_s18, %s2399_s7 }
  0x4a   :  { %p2015_p6 = pnand %p2013_p5, %p2010_p4 }
  0x4c   :  { %2018 = shalt.err (!%p2015_p6)
}
  0x4d   :  { %s2019_s29 = scalar_lea.vmem %s82_s22, 6144  ;;  %p2024_p8 = scmp.lt.s32.totalorder %s82_s22, %s82_s22 }
  0x4e   :  { %p2020_p7 = scmp.ne.s32.totalorder %s82_s22, %s2019_s29  ;;  %p2025_p9 = scmp.lt.s32.totalorder %s2019_s29, %s2019_s29 }
  0x50   :  { %p2026_p10 = por %p2025_p9, %p2024_p8 }
  0x52   :  { %p2027_p11 = pnand %p2026_p10, %p2020_p7 }
  0x54   :  { %2030 = shalt.err (!%p2027_p11)
}
  0x55   :  { %87 = dma.hbm_to_vmem [thread:$0]  %s2399_s7, 6144, %s82_s22, [#allocation12], %s2094_s13, %s2094_s13, %s2095_s14  }
  0x56   :  { %s2102_s30 = smov [#allocation14]   ;;  %s2031_s19 = scalar_lea.hbm %s2402_s10, 2048 }
  0x57   :  { %s97_s15 = sshll.u32 %s2102_s30, 4  ;;  %p2032_p12 = scmp.ne.s32.totalorder %s2402_s10, %s2031_s19  ;;  %s98_s15 = int_to_ptr.vmem [resolvable:$true] %s97_s15 }
  0x58   :  { %p2035_p13 = scmp.lt.u32.totalorder %s2031_s19, %s2402_s10 }
  0x5a   :  { %p2037_p0 = pnand %p2035_p13, %p2032_p12 }
  0x5c   :  { %2040 = shalt.err (!%p2037_p0)
}
  0x5d   :  { %s2041_s24 = scalar_lea.vmem %s98_s15, 2048  ;;  %p2046_p2 = scmp.lt.s32.totalorder %s98_s15, %s98_s15 }
  0x5e   :  { %p2042_p1 = scmp.ne.s32.totalorder %s98_s15, %s2041_s24  ;;  %p2047_p3 = scmp.lt.s32.totalorder %s2041_s24, %s2041_s24 }
  0x60   :  { %p2048_p4 = por %p2047_p3, %p2046_p2 }
  0x62   :  { %p2049_p5 = pnand %p2048_p4, %p2042_p1 }
  0x64   :  { %2052 = shalt.err (!%p2049_p5)
}
  0x65   :  { %s2103_s7 = smov 128   ;;  %s2104_s13 = smov 8  }
  0x66   :  { %103 = dma.hbm_to_vmem [thread:$0]  %s2402_s10, 2048, %s98_s15, [#allocation15], %s2103_s7, %s2103_s7, %s2104_s13  }
  0x67   :  { %2079 = dma.done.wait [#allocation6], 2048  }
  0x68   :  { %2080 = vsyncadd [#allocation6], 4294965248 }
  0x69   :  { %2081 = dma.done.wait [#allocation9], 18432  }
  0x6a   :  { %2082 = vsyncadd [#allocation9], 4294948864 }
  0x6b   :  { %2083 = dma.done.wait [#allocation12], 12288  }
  0x6c   :  { %2084 = vsyncadd [#allocation12], 4294955008 }
  0x6d   :  { %2085 = dma.done.wait [#allocation15], 2048  }
  0x6e   :  { %2086 = vsyncadd [#allocation15], 4294965248  ;;  %v2105_v0 = vmov 0.0   ;;  %v2267_v1 = vld [vmem:[%s2392_s0] sm:$0xff]  ;;  %v141_v2 = vld [vmem:[#allocation8 + $0x8] sm:$0xff] }
  0x6f   :  { %495 = vst [vmem:[#allocation3] sm:$0xff] %v2105_v0  ;;  %496 = vst [vmem:[#allocation4] sm:$0xff] %v2105_v0  ;;  %v144_v3 = vld [vmem:[#allocation8 + $0x20] sm:$0xff]  ;;  %v143_v6 = vld [vmem:[#allocation8 + $0x18] sm:$0xff] }
  0x70   :  { %v1578_v4 = vpack.c.bf16 %v144_v3, %v141_v2  ;;  %v140_v5 = vld [vmem:[#allocation8] sm:$0xff]  ;;  %v147_v7 = vld [vmem:[#allocation8 + $0x38] sm:$0xff]  ;;  %v150_v9 = vld [vmem:[#allocation8 + $0x50] sm:$0xff] }
  0x71   :  { %v1580_v8 = vpack.c.bf16 %v143_v6, %v140_v5  ;;  %v146_v10 = vld [vmem:[#allocation8 + $0x30] sm:$0xff]  ;;  %v149_v11 = vld [vmem:[#allocation8 + $0x48] sm:$0xff]  ;;  %v1582_v12 = vpack.c.bf16 %v150_v9, %v147_v7  ;;  %v156_v14 = vld [vmem:[#allocation8 + $0x80] sm:$0xff] }
  0x72   :  { %1579 = vmatprep.subr.bf16.mxu0 %v1578_v4  ;;  %v153_v13 = vld [vmem:[#allocation8 + $0x68] sm:$0xff]  ;;  %v1584_v15 = vpack.c.bf16 %v149_v11, %v146_v10  ;;  %v152_v17 = vld [vmem:[#allocation8 + $0x60] sm:$0xff]  ;;  %v155_v18 = vld [vmem:[#allocation8 + $0x78] sm:$0xff] }
  0x73   :  { %1581 = vmatpush1.bf16.msra.mxu0 %v1580_v8  ;;  %v1586_v16 = vpack.c.bf16 %v156_v14, %v153_v13  ;;  %v159_v19 = vld [vmem:[#allocation8 + $0x98] sm:$0xff]  ;;  %v162_v20 = vld [vmem:[#allocation8 + $0xb0] sm:$0xff]  ;;  %v1588_v21 = vpack.c.bf16 %v155_v18, %v152_v17  ;;  %v161_v24 = vld [vmem:[#allocation8 + $0xa8] sm:$0xff] }
  0x74   :  { %1583 = vmatprep.subr.bf16.mxu0 %v1582_v12  ;;  %v1590_v22 = vpack.c.bf16 %v162_v20, %v159_v19  ;;  %v158_v23 = vld [vmem:[#allocation8 + $0x90] sm:$0xff]  ;;  %v165_v25 = vld [vmem:[#allocation8 + $0xc8] sm:$0xff]  ;;  %v168_v26 = vld [vmem:[#allocation8 + $0xe0] sm:$0xff] }
  0x75   :  { %v190_v27 = vld [vmem:[#allocation8 + $0x190] sm:$0xff]  ;;  %v193_v28 = vld [vmem:[#allocation8 + $0x1a8] sm:$0xff]  ;;  %v1592_v30 = vpack.c.bf16 %v161_v24, %v158_v23  ;;  %v164_v31 = vld [vmem:[#allocation8 + $0xc0] sm:$0xff]  ;;  %v1594_v35 = vpack.c.bf16 %v168_v26, %v165_v25 }
  0x76   :  { %v142_v29 = vld [vmem:[#allocation8 + $0x10] sm:$0xff]  ;;  %v167_v32 = vld [vmem:[#allocation8 + $0xd8] sm:$0xff]  ;;  %v1642_v33 = vpack.c.bf16 %v193_v28, %v190_v27  ;;  %v145_v34 = vld [vmem:[#allocation8 + $0x28] sm:$0xff] }
  0x77   :  { %1585 = vmatpush1.bf16.msra.mxu0 %v1584_v15  ;;  %v171_v36 = vld [vmem:[#allocation8 + $0xf8] sm:$0xff]  ;;  %v174_v37 = vld [vmem:[#allocation8 + $0x110] sm:$0xff]  ;;  %v1644_v38 = vpack.c.bf16 %v145_v34, %v142_v29  ;;  %v196_v39 = vld [vmem:[#allocation8 + $0x1c0] sm:$0xff]  ;;  %v1596_v45 = vpack.c.bf16 %v167_v32, %v164_v31 }
  0x78   :  { %1587 = vmatprep.subr.bf16.mxu0 %v1586_v16  ;;  %1643 = vmatprep.subr.bf16.mxu1 %v1642_v33  ;;  %v199_v40 = vld [vmem:[#allocation8 + $0x1d8] sm:$0xff]  ;;  %v148_v41 = vld [vmem:[#allocation8 + $0x40] sm:$0xff]  ;;  %v170_v46 = vld [vmem:[#allocation8 + $0xf0] sm:$0xff]  ;;  %v1598_v49 = vpack.c.bf16 %v174_v37, %v171_v36 }
  0x79   :  { %v151_v42 = vld [vmem:[#allocation8 + $0x58] sm:$0xff]  ;;  %1645 = vmatpush3.bf16.msra.mxu1 %v1644_v38  ;;  %v1646_v43 = vpack.c.bf16 %v199_v40, %v196_v39  ;;  %v202_v47 = vld [vmem:[#allocation8 + $0x1f0] sm:$0xff]  ;;  %v205_v48 = vld [vmem:[#allocation8 + $0x208] sm:$0xff] }
  0x7a   :  { %v1648_v44 = vpack.c.bf16 %v151_v42, %v148_v41  ;;  %v173_v50 = vld [vmem:[#allocation8 + $0x108] sm:$0xff]  ;;  %v1650_v51 = vpack.c.bf16 %v205_v48, %v202_v47  ;;  %v154_v52 = vld [vmem:[#allocation8 + $0x70] sm:$0xff]  ;;  %v180_v55 = vld [vmem:[#allocation8 + $0x140] sm:$0xff] }
  0x7b   :  { %1589 = vmatpush1.bf16.msra.mxu0 %v1588_v21  ;;  %1647 = vmatprep.subr.bf16.mxu1 %v1646_v43  ;;  %v157_v53 = vld [vmem:[#allocation8 + $0x88] sm:$0xff]  ;;  %v208_v57 = vld [vmem:[#allocation8 + $0x220] sm:$0xff]  ;;  %v211_v58 = vld [vmem:[#allocation8 + $0x238] sm:$0xff]  ;;  %v1600_v59 = vpack.c.bf16 %v173_v50, %v170_v46 }
  0x7c   :  { %1591 = vmatprep.subr.bf16.mxu0 %v1590_v22  ;;  %v177_v54 = vld [vmem:[#allocation8 + $0x128] sm:$0xff]  ;;  %v1652_v56 = vpack.c.bf16 %v157_v53, %v154_v52  ;;  %v1654_v60 = vpack.c.bf16 %v211_v58, %v208_v57  ;;  %v160_v61 = vld [vmem:[#allocation8 + $0xa0] sm:$0xff]  ;;  %v163_v62 = vld [vmem:[#allocation8 + $0xb8] sm:$0xff] }
  0x7d   :  { %1649 = vmatpush3.bf16.msra.mxu1 %v1648_v44  ;;  %v1602_v63 = vpack.c.bf16 %v180_v55, %v177_v54  ;;  %v176_v2 = vld [vmem:[#allocation8 + $0x120] sm:$0xff]  ;;  %v179_v3 = vld [vmem:[#allocation8 + $0x138] sm:$0xff]  ;;  %v214_v4 = vld [vmem:[#allocation8 + $0x250] sm:$0xff]  ;;  %v1656_v8 = vpack.c.bf16 %v163_v62, %v160_v61 }
  0x7e   :  { %1651 = vmatprep.subr.bf16.mxu1 %v1650_v51  ;;  %v183_v5 = vld [vmem:[#allocation8 + $0x158] sm:$0xff]  ;;  %v186_v6 = vld [vmem:[#allocation8 + $0x170] sm:$0xff]  ;;  %v217_v7 = vld [vmem:[#allocation8 + $0x268] sm:$0xff]  ;;  %v1604_v9 = vpack.c.bf16 %v179_v3, %v176_v2 }
  0x7f   :  { %1593 = vmatpush1.bf16.msra.mxu0 %v1592_v30  ;;  %v182_v10 = vld [vmem:[#allocation8 + $0x150] sm:$0xff]  ;;  %v1658_v11 = vpack.c.bf16 %v217_v7, %v214_v4  ;;  %v169_v13 = vld [vmem:[#allocation8 + $0xe8] sm:$0xff]  ;;  %v1606_v14 = vpack.c.bf16 %v186_v6, %v183_v5  ;;  %v220_v16 = vld [vmem:[#allocation8 + $0x280] sm:$0xff] }
  0x80   :  { %1595 = vmatprep.subr.bf16.mxu0 %v1594_v35  ;;  %v166_v12 = vld [vmem:[#allocation8 + $0xd0] sm:$0xff]  ;;  %v185_v15 = vld [vmem:[#allocation8 + $0x168] sm:$0xff]  ;;  %v223_v17 = vld [vmem:[#allocation8 + $0x298] sm:$0xff] }
  0x81   :  { %1653 = vmatpush3.bf16.msra.mxu1 %v1652_v56  ;;  %v189_v18 = vld [vmem:[#allocation8 + $0x188] sm:$0xff]  ;;  %v192_v19 = vld [vmem:[#allocation8 + $0x1a0] sm:$0xff]  ;;  %v1660_v20 = vpack.c.bf16 %v169_v13, %v166_v12  ;;  %v1608_v21 = vpack.c.bf16 %v185_v15, %v182_v10  ;;  %v1662_v23 = vpack.c.bf16 %v223_v17, %v220_v16  ;;  %v175_v25 = vld [vmem:[#allocation8 + $0x118] sm:$0xff] }
  0x82   :  { %1655 = vmatprep.subr.bf16.mxu1 %v1654_v60  ;;  %v188_v22 = vld [vmem:[#allocation8 + $0x180] sm:$0xff]  ;;  %v1610_v26 = vpack.c.bf16 %v192_v19, %v189_v18  ;;  %v191_v27 = vld [vmem:[#allocation8 + $0x198] sm:$0xff]  ;;  %v226_v28 = vld [vmem:[#allocation8 + $0x2b0] sm:$0xff] }
  0x83   :  { %1597 = vmatpush1.bf16.msra.mxu0 %v1596_v45  ;;  %v172_v24 = vld [vmem:[#allocation8 + $0x100] sm:$0xff]  ;;  %v229_v29 = vld [vmem:[#allocation8 + $0x2c8] sm:$0xff]  ;;  %v195_v30 = vld [vmem:[#allocation8 + $0x1b8] sm:$0xff]  ;;  %v1612_v34 = vpack.c.bf16 %v191_v27, %v188_v22 }
  0x84   :  { %1599 = vmatprep.subr.bf16.mxu0 %v1598_v49  ;;  %v198_v31 = vld [vmem:[#allocation8 + $0x1d0] sm:$0xff]  ;;  %v1664_v32 = vpack.c.bf16 %v175_v25, %v172_v24  ;;  %v125_v33 = vld [vmem:[#allocation5 + $0x8] sm:$0xff]  ;;  %v1666_v36 = vpack.c.bf16 %v229_v29, %v226_v28  ;;  %v232_v41 = vld [vmem:[#allocation8 + $0x2e0] sm:$0xff] }
  0x85   :  { %1657 = vmatpush3.bf16.msra.mxu1 %v1656_v8  ;;  %v194_v35 = vld [vmem:[#allocation8 + $0x1b0] sm:$0xff]  ;;  %v181_v38 = vld [vmem:[#allocation8 + $0x148] sm:$0xff]  ;;  %v1614_v39 = vpack.c.bf16 %v198_v31, %v195_v30  ;;  %v235_v42 = vld [vmem:[#allocation8 + $0x2f8] sm:$0xff]  ;;  %430 = vmatprep.mubr.f32.mxu1 %v125_v33 }
  0x86   :  { %1659 = vmatprep.subr.bf16.mxu1 %v1658_v11  ;;  %v178_v37 = vld [vmem:[#allocation8 + $0x130] sm:$0xff]  ;;  %v197_v40 = vld [vmem:[#allocation8 + $0x1c8] sm:$0xff]  ;;  %v204_v44 = vld [vmem:[#allocation8 + $0x200] sm:$0xff]  ;;  %317 = vmatprep.mubr.f32.mxu0 %v125_v33  ;;  %v1670_v47 = vpack.c.bf16 %v235_v42, %v232_v41 }
  0x87   :  { %1601 = vmatpush1.bf16.msra.mxu0 %v1600_v59  ;;  %v201_v43 = vld [vmem:[#allocation8 + $0x1e8] sm:$0xff]  ;;  %v1668_v45 = vpack.c.bf16 %v181_v38, %v178_v37  ;;  %v1616_v46 = vpack.c.bf16 %v197_v40, %v194_v35  ;;  %v184_v48 = vld [vmem:[#allocation8 + $0x160] sm:$0xff]  ;;  %v187_v49 = vld [vmem:[#allocation8 + $0x178] sm:$0xff]  ;;  %v238_v38 = vlaneseq }
  0x88   :  { %1603 = vmatprep.subr.bf16.mxu0 %v1602_v63  ;;  %v1618_v50 = vpack.c.bf16 %v204_v44, %v201_v43  ;;  %v200_v51 = vld [vmem:[#allocation8 + $0x1e0] sm:$0xff]  ;;  %v203_v52 = vld [vmem:[#allocation8 + $0x1f8] sm:$0xff]  ;;  %v210_v54 = vld [vmem:[#allocation8 + $0x230] sm:$0xff]  ;;  %v1672_v55 = vpack.c.bf16 %v187_v49, %v184_v48 }
  0x89   :  { %1661 = vmatpush3.bf16.msra.mxu1 %v1660_v20  ;;  %v207_v53 = vld [vmem:[#allocation8 + $0x218] sm:$0xff]  ;;  %v1620_v56 = vpack.c.bf16 %v203_v52, %v200_v51  ;;  %v206_v58 = vld [vmem:[#allocation8 + $0x210] sm:$0xff]  ;;  %v209_v59 = vld [vmem:[#allocation8 + $0x228] sm:$0xff] }
  0x8a   :  { %1663 = vmatprep.subr.bf16.mxu1 %v1662_v23  ;;  %v1622_v57 = vpack.c.bf16 %v210_v54, %v207_v53  ;;  %v213_v60 = vld [vmem:[#allocation8 + $0x248] sm:$0xff]  ;;  %v216_v61 = vld [vmem:[#allocation8 + $0x260] sm:$0xff]  ;;  %v1624_v63 = vpack.c.bf16 %v209_v59, %v206_v58  ;;  %v127_v2 = vld [vmem:[#allocation5 + $0x18] sm:$0xff] }
  0x8b   :  { %1605 = vmatpush1.bf16.msra.mxu0 %v1604_v9  ;;  %v124_v62 = vld [vmem:[#allocation5] sm:$0xff]  ;;  %v1626_v3 = vpack.c.bf16 %v216_v61, %v213_v60  ;;  %v215_v5 = vld [vmem:[#allocation8 + $0x258] sm:$0xff]  ;;  %v222_v7 = vld [vmem:[#allocation8 + $0x290] sm:$0xff] }
  0x8c   :  { %1607 = vmatprep.subr.bf16.mxu0 %v1606_v14  ;;  %v212_v4 = vld [vmem:[#allocation8 + $0x240] sm:$0xff]  ;;  %v219_v6 = vld [vmem:[#allocation8 + $0x278] sm:$0xff]  ;;  %v126_v8 = vld [vmem:[#allocation5 + $0x10] sm:$0xff] }
  0x8d   :  { %1665 = vmatpush3.bf16.msra.mxu1 %v1664_v32  ;;  %v1628_v9 = vpack.c.bf16 %v215_v5, %v212_v4  ;;  %v129_v10 = vld [vmem:[#allocation5 + $0x28] sm:$0xff]  ;;  %v1630_v11 = vpack.c.bf16 %v222_v7, %v219_v6  ;;  %v218_v12 = vld [vmem:[#allocation8 + $0x270] sm:$0xff]  ;;  %v228_v15 = vld [vmem:[#allocation8 + $0x2c0] sm:$0xff] }
  0x8e   :  { %1667 = vmatprep.subr.bf16.mxu1 %v1666_v36  ;;  %v221_v13 = vld [vmem:[#allocation8 + $0x288] sm:$0xff]  ;;  %v128_v16 = vld [vmem:[#allocation5 + $0x20] sm:$0xff]  ;;  %v131_v18 = vld [vmem:[#allocation5 + $0x38] sm:$0xff] }
  0x8f   :  { %1609 = vmatpush1.bf16.msra.mxu0 %v1608_v21  ;;  %v225_v14 = vld [vmem:[#allocation8 + $0x2a8] sm:$0xff]  ;;  %v1632_v17 = vpack.c.bf16 %v221_v13, %v218_v12  ;;  %v224_v20 = vld [vmem:[#allocation8 + $0x2a0] sm:$0xff]  ;;  %v227_v21 = vld [vmem:[#allocation8 + $0x2b8] sm:$0xff] }
  0x90   :  { %1611 = vmatprep.subr.bf16.mxu0 %v1610_v26  ;;  %v1634_v19 = vpack.c.bf16 %v228_v15, %v225_v14  ;;  %v231_v22 = vld [vmem:[#allocation8 + $0x2d8] sm:$0xff]  ;;  %v234_v23 = vld [vmem:[#allocation8 + $0x2f0] sm:$0xff]  ;;  %v1636_v25 = vpack.c.bf16 %v227_v21, %v224_v20  ;;  %v133_v26 = vld [vmem:[#allocation5 + $0x48] sm:$0xff] }
  0x91   :  { %1669 = vmatpush3.bf16.msra.mxu1 %v1668_v45  ;;  %v130_v24 = vld [vmem:[#allocation5 + $0x30] sm:$0xff]  ;;  %v1638_v27 = vpack.c.bf16 %v234_v23, %v231_v22  ;;  %v233_v29 = vld [vmem:[#allocation8 + $0x2e8] sm:$0xff]  ;;  %v132_v30 = vld [vmem:[#allocation5 + $0x40] sm:$0xff] }
  0x92   :  { %1671 = vmatprep.subr.bf16.mxu1 %v1670_v47  ;;  %v230_v28 = vld [vmem:[#allocation8 + $0x2d0] sm:$0xff]  ;;  %v135_v32 = vld [vmem:[#allocation5 + $0x58] sm:$0xff]  ;;  %v136_v35 = vld [vmem:[#allocation5 + $0x60] sm:$0xff] }
  0x93   :  { %1613 = vmatpush1.bf16.msra.mxu0 %v1612_v34  ;;  %v1640_v31 = vpack.c.bf16 %v233_v29, %v230_v28  ;;  %v134_v33 = vld [vmem:[#allocation5 + $0x50] sm:$0xff]  ;;  %v137_v34 = vld [vmem:[#allocation5 + $0x68] sm:$0xff]  ;;  %v139_v36 = vld [vmem:[#allocation5 + $0x78] sm:$0xff] }
  0x94   :  { %1615 = vmatprep.subr.bf16.mxu0 %v1614_v39  ;;  %v138_v37 = vld [vmem:[#allocation5 + $0x70] sm:$0xff]  ;;  %v239_v39 = vshrl.u32 %v238_v38, 7  ;;  %v236_v41 = vld [vmem:[%s2396_s4] sm:$0x7]  ;;  %s2301_s4 = smov 0  }
  0x95   :  { %1673 = vmatpush3.bf16.msra.mxu1 %v1672_v55 }
  0x96   :  { %v2269_v40 = vsub.s32 2, %v239_v39  ;;  %v2277_v59 = vsub.s32 1, %v239_v39 }
  0x97   :  { %1617 = vmatpush1.bf16.msra.mxu0 %v1616_v46 }
  0x98   :  { %1619 = vmatprep.subr.bf16.mxu0 %v1618_v50  ;;  %431 = vmatmul.mubr.f32.vlgmr.msra.gmra.mrb[0].mxu1 %v124_v62  ;;  %v249_v43 = vrot.slane %v236_v41, %v2269_v40 }
  0x99   :  { %435 = vmatprep.mubr.f32.mxu1 %v127_v2 }
  0x9b   :  { %1621 = vmatpush1.bf16.msra.mxu0 %v1620_v56 }
  0x9c   :  { %1623 = vmatprep.subr.bf16.mxu0 %v1622_v57  ;;  %436 = vmatmul.mubr.f32.gmra.mrb[2].mxu1 %v126_v8  ;;  %v2275_v57 = vsub.s32 0, %v239_v39 }
  0x9d   :  { %440 = vmatprep.mubr.f32.mxu1 %v129_v10 }
  0x9f   :  { %1625 = vmatpush1.bf16.msra.mxu0 %v1624_v63  ;;  %v2280_v63 = vrot.slane %v236_v41, %v2275_v57 }
  0xa0   :  { %1627 = vmatprep.subr.bf16.mxu0 %v1626_v3  ;;  %441 = vmatmul.mubr.f32.gmra.mrb[4].mxu1 %v128_v16  ;;  %v2283_v3 = vrot.slane %v236_v41, %v2277_v59 }
  0xa1   :  { %445 = vmatprep.mubr.f32.mxu1 %v131_v18 }
  0xa3   :  { %1629 = vmatpush1.bf16.msra.mxu0 %v1628_v9 }
  0xa4   :  { %1631 = vmatprep.subr.bf16.mxu0 %v1630_v11  ;;  %446 = vmatmul.mubr.f32.gmra.mrb[6].mxu1 %v130_v24 }
  0xa5   :  { %450 = vmatprep.mubr.f32.mxu1 %v133_v26 }
  0xa7   :  { %1633 = vmatpush1.bf16.msra.mxu0 %v1632_v17 }
  0xa8   :  { %1635 = vmatprep.subr.bf16.mxu0 %v1634_v19  ;;  %451 = vmatmul.mubr.f32.gmra.mrb[8].mxu1 %v132_v30 }
  0xa9   :  { %455 = vmatprep.mubr.f32.mxu1 %v135_v32 }
  0xab   :  { %1637 = vmatpush1.bf16.msra.mxu0 %v1636_v25 }
  0xac   :  { %1639 = vmatprep.subr.bf16.mxu0 %v1638_v27  ;;  %456 = vmatmul.mubr.f32.gmra.mrb[10].mxu1 %v134_v33 }
  0xad   :  { %460 = vmatprep.mubr.f32.mxu1 %v137_v34 }
  0xaf   :  { %1641 = vmatpush1.bf16.msra.mxu0 %v1640_v31 }
  0xb0   :  { %461 = vmatmul.mubr.f32.gmra.mrb[12].mxu1 %v136_v35 }
  0xb1   :  { %465 = vmatprep.mubr.f32.mxu1 %v139_v36 }
  0xb2   :  { %318 = vmatmul.mubr.f32.vlgmr.msra.gmra.mrb[0].mxu0 %v124_v62 }
  0xb3   :  { %323 = vmatprep.mubr.f32.mxu0 %v127_v2 }
  0xb4   :  { %466 = vmatmul.mubr.f32.gmra.mrb[14].mxu1 %v138_v37 }
  0xb6   :  { %324 = vmatmul.mubr.f32.gmra.mrb[2].mxu0 %v126_v8 }
  0xb7   :  { %329 = vmatprep.mubr.f32.mxu0 %v129_v10 }
  0xba   :  { %330 = vmatmul.mubr.f32.gmra.mrb[4].mxu0 %v128_v16 }
  0xbb   :  { %335 = vmatprep.mubr.f32.mxu0 %v131_v18 }
  0xbe   :  { %336 = vmatmul.mubr.f32.gmra.mrb[6].mxu0 %v130_v24 }
  0xbf   :  { %341 = vmatprep.mubr.f32.mxu0 %v133_v26 }
  0xc2   :  { %342 = vmatmul.mubr.f32.gmra.mrb[8].mxu0 %v132_v30 }
  0xc3   :  { %347 = vmatprep.mubr.f32.mxu0 %v135_v32 }
  0xc6   :  { %348 = vmatmul.mubr.f32.gmra.mrb[10].mxu0 %v134_v33 }
  0xc7   :  { %353 = vmatprep.mubr.f32.mxu0 %v137_v34 }
  0xca   :  { %354 = vmatmul.mubr.f32.gmra.mrb[12].mxu0 %v136_v35 }
  0xcb   :  { %359 = vmatprep.mubr.f32.mxu0 %v139_v36 }
  0xce   :  { %360 = vmatmul.mubr.f32.gmra.mrb[14].mxu0 %v138_v37 }
 0x16b   :  { %v1346_v42 = vpop.f32.mrb[0].mxu1 }
 0x16c   :  { %v1347_v44 = vpop.f32.mrb[1].mxu1 }
 0x16d   :  { %v1348_v45 = vadd.f32 %v1347_v44, %v1346_v42 }
 0x16f   :  { %v433_v46 = vadd.f32 %v1348_v45, %v249_v43  ;;  %v1349_v47 = vpop.f32.mrb[2].mxu1 }
 0x170   :  { %v1350_v48 = vpop.f32.mrb[3].mxu1 }
 0x171   :  { %473 = vst [vmem:[#allocation2 + $0x10] sm:$0xff] %v433_v46  ;;  %v1351_v49 = vadd.f32 %v1350_v48, %v1349_v47 }
 0x173   :  { %v438_v50 = vadd.f32 %v1351_v49, %v249_v43  ;;  %v1352_v51 = vpop.f32.mrb[4].mxu1 }
 0x174   :  { %v1353_v52 = vpop.f32.mrb[5].mxu1 }
 0x175   :  { %476 = vst [vmem:[#allocation2 + $0x28] sm:$0xff] %v438_v50  ;;  %v1354_v53 = vadd.f32 %v1353_v52, %v1352_v51 }
 0x177   :  { %v443_v54 = vadd.f32 %v1354_v53, %v249_v43  ;;  %v1355_v55 = vpop.f32.mrb[6].mxu1 }
 0x178   :  { %v1356_v56 = vpop.f32.mrb[7].mxu1 }
 0x179   :  { %479 = vst [vmem:[#allocation2 + $0x40] sm:$0xff] %v443_v54  ;;  %v1357_v58 = vadd.f32 %v1356_v56, %v1355_v55 }
 0x17b   :  { %v448_v60 = vadd.f32 %v1357_v58, %v249_v43  ;;  %v1358_v61 = vpop.f32.mrb[8].mxu1 }
 0x17c   :  { %v1359_v62 = vpop.f32.mrb[9].mxu1 }
 0x17d   :  { %482 = vst [vmem:[#allocation2 + $0x58] sm:$0xff] %v448_v60  ;;  %v1360_v2 = vadd.f32 %v1359_v62, %v1358_v61 }
 0x17f   :  { %v453_v4 = vadd.f32 %v1360_v2, %v249_v43  ;;  %v1361_v5 = vpop.f32.mrb[10].mxu1 }
 0x180   :  { %v1362_v7 = vpop.f32.mrb[11].mxu1 }
 0x181   :  { %485 = vst [vmem:[#allocation2 + $0x70] sm:$0xff] %v453_v4  ;;  %v1363_v10 = vadd.f32 %v1362_v7, %v1361_v5 }
 0x183   :  { %v458_v12 = vadd.f32 %v1363_v10, %v249_v43  ;;  %v1364_v13 = vpop.f32.mrb[12].mxu1 }
 0x184   :  { %v1365_v15 = vpop.f32.mrb[13].mxu1 }
 0x185   :  { %v319_v6 = vpop.f32.mrb[0].mxu0  ;;  %488 = vst [vmem:[#allocation2 + $0x88] sm:$0xff] %v458_v12  ;;  %v1366_v18 = vadd.f32 %v1365_v15, %v1364_v13 }
 0x186   :  { %v320_v8 = vadd.f32 %v319_v6, %v2280_v63  ;;  %v321_v9 = vpop.f32.mrb[1].mxu0 }
 0x187   :  { %v322_v11 = vadd.f32 %v321_v9, %v2283_v3  ;;  %v463_v20 = vadd.f32 %v1366_v18, %v249_v43  ;;  %v1367_v21 = vpop.f32.mrb[14].mxu1 }
 0x188   :  { %471 = vst [vmem:[#allocation2] sm:$0xff] %v320_v8  ;;  %v1368_v23 = vpop.f32.mrb[15].mxu1 }
 0x189   :  { %472 = vst [vmem:[#allocation2 + $0x8] sm:$0xff] %v322_v11  ;;  %v325_v14 = vpop.f32.mrb[2].mxu0  ;;  %491 = vst [vmem:[#allocation2 + $0xa0] sm:$0xff] %v463_v20  ;;  %v1369_v26 = vadd.f32 %v1368_v23, %v1367_v21 }
 0x18a   :  { %v326_v16 = vadd.f32 %v325_v14, %v2280_v63  ;;  %v327_v17 = vpop.f32.mrb[3].mxu0 }
 0x18b   :  { %v328_v19 = vadd.f32 %v327_v17, %v2283_v3  ;;  %v468_v28 = vadd.f32 %v1369_v26, %v249_v43 }
 0x18c   :  { %474 = vst [vmem:[#allocation2 + $0x18] sm:$0xff] %v326_v16 }
 0x18d   :  { %475 = vst [vmem:[#allocation2 + $0x20] sm:$0xff] %v328_v19  ;;  %v331_v22 = vpop.f32.mrb[4].mxu0  ;;  %494 = vst [vmem:[#allocation2 + $0xb8] sm:$0xff] %v468_v28 }
 0x18e   :  { %v332_v24 = vadd.f32 %v331_v22, %v2280_v63  ;;  %v333_v25 = vpop.f32.mrb[5].mxu0 }
 0x18f   :  { %v334_v27 = vadd.f32 %v333_v25, %v2283_v3 }
 0x190   :  { %477 = vst [vmem:[#allocation2 + $0x30] sm:$0xff] %v332_v24 }
 0x191   :  { %478 = vst [vmem:[#allocation2 + $0x38] sm:$0xff] %v334_v27  ;;  %v337_v29 = vpop.f32.mrb[6].mxu0 }
 0x192   :  { %v338_v30 = vadd.f32 %v337_v29, %v2280_v63  ;;  %v339_v31 = vpop.f32.mrb[7].mxu0 }
 0x193   :  { %v340_v32 = vadd.f32 %v339_v31, %v2283_v3 }
 0x194   :  { %480 = vst [vmem:[#allocation2 + $0x48] sm:$0xff] %v338_v30 }
 0x195   :  { %481 = vst [vmem:[#allocation2 + $0x50] sm:$0xff] %v340_v32  ;;  %v343_v33 = vpop.f32.mrb[8].mxu0 }
 0x196   :  { %v344_v34 = vadd.f32 %v343_v33, %v2280_v63  ;;  %v345_v35 = vpop.f32.mrb[9].mxu0 }
 0x197   :  { %v346_v36 = vadd.f32 %v345_v35, %v2283_v3 }
 0x198   :  { %483 = vst [vmem:[#allocation2 + $0x60] sm:$0xff] %v344_v34 }
 0x199   :  { %484 = vst [vmem:[#allocation2 + $0x68] sm:$0xff] %v346_v36  ;;  %v349_v37 = vpop.f32.mrb[10].mxu0 }
 0x19a   :  { %v350_v38 = vadd.f32 %v349_v37, %v2280_v63  ;;  %v351_v39 = vpop.f32.mrb[11].mxu0 }
 0x19b   :  { %v352_v41 = vadd.f32 %v351_v39, %v2283_v3 }
 0x19c   :  { %486 = vst [vmem:[#allocation2 + $0x78] sm:$0xff] %v350_v38 }
 0x19d   :  { %487 = vst [vmem:[#allocation2 + $0x80] sm:$0xff] %v352_v41  ;;  %v355_v42 = vpop.f32.mrb[12].mxu0 }
 0x19e   :  { %v356_v43 = vadd.f32 %v355_v42, %v2280_v63  ;;  %v357_v44 = vpop.f32.mrb[13].mxu0 }
 0x19f   :  { %v358_v45 = vadd.f32 %v357_v44, %v2283_v3 }
 0x1a0   :  { %489 = vst [vmem:[#allocation2 + $0x90] sm:$0xff] %v356_v43 }
 0x1a1   :  { %490 = vst [vmem:[#allocation2 + $0x98] sm:$0xff] %v358_v45  ;;  %v361_v46 = vpop.f32.mrb[14].mxu0 }
 0x1a2   :  { %v362_v47 = vadd.f32 %v361_v46, %v2280_v63  ;;  %v363_v48 = vpop.f32.mrb[15].mxu0 }
 0x1a3   :  { %v364_v49 = vadd.f32 %v363_v48, %v2283_v3 }
 0x1a4   :  { %492 = vst [vmem:[#allocation2 + $0xa8] sm:$0xff] %v362_v47 }
 0x1a5   :  { %493 = vst [vmem:[#allocation2 + $0xb0] sm:$0xff] %v364_v49 }
 0x1a6 LB: > { %v516_v50 = vld [vmem:[#allocation10 + $0x8] sm:$0xff]  ;;  %v519_v51 = vld [vmem:[#allocation10 + $0x20] sm:$0xff]  ;;  %v518_v54 = vld [vmem:[#allocation10 + $0x18] sm:$0xff]  ;;  %v2106_v58 = vmov 0.0|0.0   ;;  %v2107_v60 = vmov 0.0   ;;  %vm2108_vm0 = vmmov 0   ;;  %v1175_v5 = vstv %s2091_s4  ;;  %s2091_s4 = sphi %s2301_s4, %s503_s4  }
 0x1a7   : > { %v515_v52 = vld [vmem:[#allocation10] sm:$0xff]  ;;  %v1674_v53 = vpack.c.bf16 %v519_v51, %v516_v50  ;;  %v522_v55 = vld [vmem:[#allocation10 + $0x38] sm:$0xff]  ;;  %v525_v56 = vld [vmem:[#allocation10 + $0x50] sm:$0xff]  ;;  %1706 = vmatprep.subr.bf16.mxu1 %v2106_v58  ;;  %644 = vmatprep.mubr.f32.mxu0 %v2107_v60  ;;  %v2109_v4 = vmov 0   ;;  %vm1176_vm1 = vcmp.gt.s32.totalorder %v2267_v1, %v1175_v5  ;;  %s1306_s25 = sshll.u32 %s2091_s4, 3  ;;  %s503_s4 = sadd.s32 1, %s2091_s4  }
 0x1a8   : > { %v1676_v61 = vpack.c.bf16 %v518_v54, %v515_v52  ;;  %v1678_v62 = vpack.c.bf16 %v525_v56, %v522_v55  ;;  %v521_v63 = vld [vmem:[#allocation10 + $0x30] sm:$0xff]  ;;  %v524_v2 = vld [vmem:[#allocation10 + $0x48] sm:$0xff]  ;;  %1470 = vmatprep.mubr.msk.f32.mxu1 %vm2108_vm0, %v2107_v60  ;;  %1900 = vset.pattern.permute.xlu0 %v2109_v4  ;;  %v531_v6 = vld [vmem:[#allocation10 + $0x80] sm:$0xff]  ;;  %v1177_v8 = vsel %vm1176_vm1, 1, %v2109_v4  ;;  %s507_s26 = sshra.s32 %s1306_s25, 3  ;;  %p500_p6 = scmp.ge.s32.totalorder %s503_s4, 8  }
 0x1a9   : > { %v528_v3 = vld [vmem:[#allocation10 + $0x68] sm:$0xff]  ;;  %1675 = vmatprep.subr.bf16.mxu0 %v1674_v53  ;;  %v1680_v7 = vpack.c.bf16 %v524_v2, %v521_v63  ;;  %v527_v10 = vld [vmem:[#allocation10 + $0x60] sm:$0xff]  ;;  %v530_v11 = vld [vmem:[#allocation10 + $0x78] sm:$0xff]  ;;  %1179 = vperm.xlu0 %1900, %v1177_v8   ;;  %s1313_s27 = smul.u32 24, %s507_s26  ;;  %vm2111_vm3 = vmmov (%p500_p6), 0  }
 0x1aa   : > { %1677 = vmatpush1.bf16.msra.mxu0 %v1676_v61  ;;  %v1682_v9 = vpack.c.bf16 %v531_v6, %v528_v3  ;;  %v534_v12 = vld [vmem:[#allocation10 + $0x98] sm:$0xff]  ;;  %v537_v13 = vld [vmem:[#allocation10 + $0xb0] sm:$0xff]  ;;  %v1684_v14 = vpack.c.bf16 %v530_v11, %v527_v10  ;;  %v536_v17 = vld [vmem:[#allocation10 + $0xa8] sm:$0xff] }
 0x1ab   : > { %1679 = vmatprep.subr.bf16.mxu0 %v1678_v62  ;;  %v1686_v15 = vpack.c.bf16 %v537_v13, %v534_v12  ;;  %v533_v16 = vld [vmem:[#allocation10 + $0x90] sm:$0xff]  ;;  %v540_v18 = vld [vmem:[#allocation10 + $0xc8] sm:$0xff]  ;;  %v543_v19 = vld [vmem:[#allocation10 + $0xe0] sm:$0xff]  ;;  %s511_s3 = scalar_lea.vmem [#allocation2], %s1313_s27 }
 0x1ac   : > { %v517_v20 = vld [vmem:[#allocation10 + $0x10] sm:$0xff]  ;;  %v520_v21 = vld [vmem:[#allocation10 + $0x28] sm:$0xff]  ;;  %v523_v23 = vld [vmem:[#allocation10 + $0x40] sm:$0xff]  ;;  %v1688_v24 = vpack.c.bf16 %v536_v17, %v533_v16  ;;  %v1690_v26 = vpack.c.bf16 %v543_v19, %v540_v18 }
 0x1ad   : > { %v1707_v22 = vpack.c.bf16 %v520_v21, %v517_v20  ;;  %v526_v25 = vld [vmem:[#allocation10 + $0x58] sm:$0xff]  ;;  %v539_v27 = vld [vmem:[#allocation10 + $0xc0] sm:$0xff]  ;;  %v549_v31 = vld [vmem:[#allocation10 + $0x110] sm:$0xff] }
 0x1ae   : > { %1681 = vmatpush1.bf16.msra.mxu0 %v1680_v7  ;;  %v542_v28 = vld [vmem:[#allocation10 + $0xd8] sm:$0xff]  ;;  %v1710_v30 = vpack.c.bf16 %v526_v25, %v523_v23  ;;  %v529_v32 = vld [vmem:[#allocation10 + $0x70] sm:$0xff]  ;;  %v532_v33 = vld [vmem:[#allocation10 + $0x88] sm:$0xff] }
 0x1af   : > { %1683 = vmatprep.subr.bf16.mxu0 %v1682_v9  ;;  %v546_v29 = vld [vmem:[#allocation10 + $0xf8] sm:$0xff]  ;;  %1708 = vmatpush3.bf16.msra.mxu1 %v1707_v22  ;;  %v1692_v34 = vpack.c.bf16 %v542_v28, %v539_v27  ;;  %v545_v36 = vld [vmem:[#allocation10 + $0xf0] sm:$0xff]  ;;  %v548_v37 = vld [vmem:[#allocation10 + $0x108] sm:$0xff]  ;;  %v1713_v39 = vpack.c.bf16 %v532_v33, %v529_v32 }
 0x1b0   : > { %1709 = vmatprep.subr.bf16.mxu1 %v2106_v58  ;;  %v1694_v35 = vpack.c.bf16 %v549_v31, %v546_v29  ;;  %v552_v38 = vld [vmem:[#allocation10 + $0x128] sm:$0xff]  ;;  %v555_v41 = vld [vmem:[#allocation10 + $0x140] sm:$0xff]  ;;  %v538_v43 = vld [vmem:[#allocation10 + $0xb8] sm:$0xff]  ;;  %v1696_v44 = vpack.c.bf16 %v548_v37, %v545_v36 }
 0x1b1   : > { %v535_v42 = vld [vmem:[#allocation10 + $0xa0] sm:$0xff]  ;;  %v1698_v45 = vpack.c.bf16 %v555_v41, %v552_v38  ;;  %v554_v47 = vld [vmem:[#allocation10 + $0x138] sm:$0xff]  ;;  %v561_v50 = vld [vmem:[#allocation10 + $0x170] sm:$0xff] }
 0x1b2   : > { %1685 = vmatpush1.bf16.msra.mxu0 %v1684_v14  ;;  %v551_v46 = vld [vmem:[#allocation10 + $0x120] sm:$0xff]  ;;  %v558_v48 = vld [vmem:[#allocation10 + $0x158] sm:$0xff]  ;;  %v1716_v49 = vpack.c.bf16 %v538_v43, %v535_v42  ;;  %v541_v51 = vld [vmem:[#allocation10 + $0xd0] sm:$0xff] }
 0x1b3   : > { %1687 = vmatprep.subr.bf16.mxu0 %v1686_v15  ;;  %1711 = vmatpush3.bf16.msra.mxu1 %v1710_v30  ;;  %v544_v52 = vld [vmem:[#allocation10 + $0xe8] sm:$0xff]  ;;  %v1700_v53 = vpack.c.bf16 %v554_v47, %v551_v46  ;;  %v1702_v54 = vpack.c.bf16 %v561_v50, %v558_v48  ;;  %v557_v55 = vld [vmem:[#allocation10 + $0x150] sm:$0xff]  ;;  %v547_v62 = vld [vmem:[#allocation10 + $0x100] sm:$0xff] }
 0x1b4   : > { %1712 = vmatprep.subr.bf16.mxu1 %v2106_v58  ;;  %v560_v56 = vld [vmem:[#allocation10 + $0x168] sm:$0xff]  ;;  %v1719_v61 = vpack.c.bf16 %v544_v52, %v541_v51  ;;  %v550_v63 = vld [vmem:[#allocation10 + $0x118] sm:$0xff]  ;;  %v553_v4 = vld [vmem:[#allocation10 + $0x130] sm:$0xff] }
 0x1b5   : > { %v1704_v2 = vpack.c.bf16 %v560_v56, %v557_v55  ;;  %v1722_v3 = vpack.c.bf16 %v550_v63, %v547_v62  ;;  %v556_v5 = vld [vmem:[#allocation10 + $0x148] sm:$0xff]  ;;  %v2317_v6 = vld [vmem:[#allocation3] sm:$0xff]  ;;  %v559_v8 = vld [vmem:[#allocation10 + $0x160] sm:$0xff] }
 0x1b6   : > { %1689 = vmatpush1.bf16.msra.mxu0 %v1688_v24  ;;  %v1725_v7 = vpack.c.bf16 %v556_v5, %v553_v4  ;;  %v562_v9 = vld [vmem:[#allocation10 + $0x178] sm:$0xff]  ;;  %v743_v11 = vld [vmem:[#allocation11 + $0x8] sm:$0xff]  ;;  %v746_v12 = vld [vmem:[#allocation11 + $0x20] sm:$0xff] }
 0x1b7   : > { %1691 = vmatprep.subr.bf16.mxu0 %v1690_v26  ;;  %1714 = vmatpush3.bf16.msra.mxu1 %v1713_v39  ;;  %v1728_v10 = vpack.c.bf16 %v562_v9, %v559_v8  ;;  %v1730_v13 = vpack.c.bf16 %v746_v12, %v743_v11  ;;  %v742_v14 = vld [vmem:[#allocation11] sm:$0xff]  ;;  %v745_v15 = vld [vmem:[#allocation11 + $0x18] sm:$0xff]  ;;  %v744_v17 = vld [vmem:[#allocation11 + $0x10] sm:$0xff] }
 0x1b8   : > { %1715 = vmatprep.subr.bf16.mxu1 %v2106_v58  ;;  %v1732_v16 = vpack.c.bf16 %v745_v15, %v742_v14  ;;  %v747_v18 = vld [vmem:[#allocation11 + $0x28] sm:$0xff]  ;;  %v749_v20 = vld [vmem:[#allocation11 + $0x38] sm:$0xff]  ;;  %v752_v21 = vld [vmem:[#allocation11 + $0x50] sm:$0xff] }
 0x1b9   : > { %v1763_v19 = vpack.c.bf16 %v747_v18, %v744_v17  ;;  %v1734_v22 = vpack.c.bf16 %v752_v21, %v749_v20  ;;  %v748_v23 = vld [vmem:[#allocation11 + $0x30] sm:$0xff]  ;;  %v751_v24 = vld [vmem:[#allocation11 + $0x48] sm:$0xff]  ;;  %v750_v26 = vld [vmem:[#allocation11 + $0x40] sm:$0xff] }
 0x1ba   : > { %1693 = vmatpush1.bf16.msra.mxu0 %v1692_v34  ;;  %v1736_v25 = vpack.c.bf16 %v751_v24, %v748_v23  ;;  %v753_v27 = vld [vmem:[#allocation11 + $0x58] sm:$0xff]  ;;  %v755_v29 = vld [vmem:[#allocation11 + $0x68] sm:$0xff]  ;;  %v758_v30 = vld [vmem:[#allocation11 + $0x80] sm:$0xff] }
 0x1bb   : > { %1695 = vmatprep.subr.bf16.mxu0 %v1694_v35  ;;  %1717 = vmatpush3.bf16.msra.mxu1 %v1716_v49  ;;  %v1766_v28 = vpack.c.bf16 %v753_v27, %v750_v26  ;;  %v754_v31 = vld [vmem:[#allocation11 + $0x60] sm:$0xff]  ;;  %v1738_v32 = vpack.c.bf16 %v758_v30, %v755_v29  ;;  %v757_v33 = vld [vmem:[#allocation11 + $0x78] sm:$0xff]  ;;  %v756_v35 = vld [vmem:[#allocation11 + $0x70] sm:$0xff] }
 0x1bc   : > { %1718 = vmatprep.subr.bf16.mxu1 %v2106_v58  ;;  %v1740_v34 = vpack.c.bf16 %v757_v33, %v754_v31  ;;  %v759_v36 = vld [vmem:[#allocation11 + $0x88] sm:$0xff]  ;;  %v761_v38 = vld [vmem:[#allocation11 + $0x98] sm:$0xff]  ;;  %v764_v39 = vld [vmem:[#allocation11 + $0xb0] sm:$0xff] }
 0x1bd   : > { %v1769_v37 = vpack.c.bf16 %v759_v36, %v756_v35  ;;  %v1742_v41 = vpack.c.bf16 %v764_v39, %v761_v38  ;;  %v760_v42 = vld [vmem:[#allocation11 + $0x90] sm:$0xff]  ;;  %v763_v43 = vld [vmem:[#allocation11 + $0xa8] sm:$0xff]  ;;  %v765_v46 = vld [vmem:[#allocation11 + $0xb8] sm:$0xff] }
 0x1be   : > { %1697 = vmatpush1.bf16.msra.mxu0 %v1696_v44  ;;  %v1744_v44 = vpack.c.bf16 %v763_v43, %v760_v42  ;;  %v767_v48 = vld [vmem:[#allocation11 + $0xc8] sm:$0xff]  ;;  %v770_v49 = vld [vmem:[#allocation11 + $0xe0] sm:$0xff]  ;;  %v769_v52 = vld [vmem:[#allocation11 + $0xd8] sm:$0xff] }
 0x1bf   : > { %1699 = vmatprep.subr.bf16.mxu0 %v1698_v45  ;;  %1720 = vmatpush3.bf16.msra.mxu1 %v1719_v61  ;;  %v762_v45 = vld [vmem:[#allocation11 + $0xa0] sm:$0xff]  ;;  %v1746_v50 = vpack.c.bf16 %v770_v49, %v767_v48  ;;  %v771_v55 = vld [vmem:[#allocation11 + $0xe8] sm:$0xff]  ;;  %v773_v61 = vld [vmem:[#allocation11 + $0xf8] sm:$0xff] }
 0x1c0   : > { %1721 = vmatprep.subr.bf16.mxu1 %v2106_v58  ;;  %v1772_v47 = vpack.c.bf16 %v765_v46, %v762_v45  ;;  %v766_v51 = vld [vmem:[#allocation11 + $0xc0] sm:$0xff]  ;;  %v776_v62 = vld [vmem:[#allocation11 + $0x110] sm:$0xff]  ;;  %v779_v8 = vld [vmem:[#allocation11 + $0x128] sm:$0xff] }
 0x1c1   : > { %v1750_v63 = vpack.c.bf16 %v776_v62, %v773_v61  ;;  %v774_v4 = vld [vmem:[#allocation11 + $0x100] sm:$0xff]  ;;  %v780_v14 = vld [vmem:[#allocation11 + $0x130] sm:$0xff]  ;;  %v785_v17 = vld [vmem:[#allocation11 + $0x158] sm:$0xff] }
 0x1c2   : > { %1701 = vmatpush1.bf16.msra.mxu0 %v1700_v53  ;;  %v1748_v53 = vpack.c.bf16 %v769_v52, %v766_v51  ;;  %v782_v9 = vld [vmem:[#allocation11 + $0x140] sm:$0xff]  ;;  %v788_v18 = vld [vmem:[#allocation11 + $0x170] sm:$0xff]  ;;  %v789_v24 = vld [vmem:[#allocation11 + $0x178] sm:$0xff] }
 0x1c3   : > { %1703 = vmatprep.subr.bf16.mxu0 %v1702_v54  ;;  %1723 = vmatpush3.bf16.msra.mxu1 %v1722_v3  ;;  %v768_v54 = vld [vmem:[#allocation11 + $0xd0] sm:$0xff]  ;;  %v775_v3 = vld [vmem:[#allocation11 + $0x108] sm:$0xff]  ;;  %v1754_v11 = vpack.c.bf16 %v782_v9, %v779_v8  ;;  %v778_v12 = vld [vmem:[#allocation11 + $0x120] sm:$0xff]  ;;  %v1758_v20 = vpack.c.bf16 %v788_v18, %v785_v17 }
 0x1c4   : > { %1724 = vmatprep.subr.bf16.mxu1 %v2106_v58  ;;  %v1775_v56 = vpack.c.bf16 %v771_v55, %v768_v54  ;;  %v784_v21 = vld [vmem:[#allocation11 + $0x150] sm:$0xff]  ;;  %v786_v23 = vld [vmem:[#allocation11 + $0x160] sm:$0xff]  ;;  %v949_v27 = vld [vmem:[#allocation13 + $0x8] sm:$0xff] }
 0x1c5   : > { %v1784_v26 = vpack.c.bf16 %v789_v24, %v786_v23  ;;  %v563_v30 = vld [vmem:[%s2397_s5] sm:$0x7]  ;;  %v513_v36 = vld [vmem:[%s511_s3 + $0x8] sm:$0xff]  ;;  %v958_v8 = vld [vmem:[#allocation13 + $0x50] sm:$0xff] }
 0x1c6   : > { %1705 = vmatpush1.bf16.msra.mxu0 %v1704_v2  ;;  %v772_v2 = vld [vmem:[#allocation11 + $0xf0] sm:$0xff]  ;;  %v568_v31 = vrot.slane %v563_v30, %v2275_v57  ;;  %v512_v33 = vld [vmem:[%s511_s3] sm:$0xff]  ;;  %v576_v48 = vrot.slane %v563_v30, %v2269_v40  ;;  %v959_v18 = vld [vmem:[#allocation13 + $0x58] sm:$0xff] }
 0x1c7   : > { %1726 = vmatpush3.bf16.msra.mxu1 %v1725_v7  ;;  %1731 = vmatprep.subr.bf16.mxu0 %v1730_v13  ;;  %v1752_v5 = vpack.c.bf16 %v775_v3, %v772_v2  ;;  %v777_v7 = vld [vmem:[#allocation11 + $0x118] sm:$0xff]  ;;  %v948_v61 = vld [vmem:[#allocation13] sm:$0xff]  ;;  %v950_v3 = vld [vmem:[#allocation13 + $0x10] sm:$0xff] }
 0x1c8   : > { %1727 = vmatprep.subr.bf16.mxu1 %v2106_v58  ;;  %v781_v13 = vld [vmem:[#allocation11 + $0x138] sm:$0xff]  ;;  %v956_v17 = vld [vmem:[#allocation13 + $0x40] sm:$0xff] }
 0x1c9   : > { %645 = vmatmul.mubr.f32.vlgmr.msra.gmra.mrb[0].mxu0 %v2317_v6  ;;  %v1756_v15 = vpack.c.bf16 %v781_v13, %v778_v12  ;;  %v951_v2 = vld [vmem:[#allocation13 + $0x18] sm:$0xff]  ;;  %v954_v12 = vld [vmem:[#allocation13 + $0x30] sm:$0xff]  ;;  %v960_v23 = vld [vmem:[#allocation13 + $0x60] sm:$0xff]  ;;  %v1822_v24 = vpack.c.bf16 %v959_v18, %v956_v17 }
 0x1ca   : > { %871 = vmatprep.mubr.f32.mxu0 %v2107_v60  ;;  %1733 = vmatpush1.bf16.msra.mxu0 %v1732_v16  ;;  %v783_v16 = vld [vmem:[#allocation11 + $0x148] sm:$0xff] }
 0x1cb   : > { %1729 = vmatpush3.bf16.msra.mxu1 %v1728_v10  ;;  %1735 = vmatprep.subr.bf16.mxu0 %v1734_v22  ;;  %v1778_v10 = vpack.c.bf16 %v777_v7, %v774_v4  ;;  %v787_v22 = vld [vmem:[#allocation11 + $0x168] sm:$0xff]  ;;  %v955_v7 = vld [vmem:[#allocation13 + $0x38] sm:$0xff] }
 0x1cc   : > { %1762 = vmatprep.subr.bf16.mxu1 %v2106_v58  ;;  %v953_v4 = vld [vmem:[#allocation13 + $0x28] sm:$0xff] }
 0x1cd   : > { %v1819_v13 = vpack.c.bf16 %v953_v4, %v950_v3  ;;  %v987_v4 = vld [vmem:[#allocation13 + $0x138] sm:$0xff] }
 0x1ce   : > { %1471 = vmatmul.mubr.f32.vlgmr.msra.gmra.mrb[0].mxu1 %v2317_v6  ;;  %1737 = vmatpush1.bf16.msra.mxu0 %v1736_v25  ;;  %v1760_v25 = vpack.c.bf16 %v787_v22, %v784_v21 }
 0x1cf   : > { %1505 = vmatprep.mubr.msk.f32.mxu1 %vm2108_vm0, %v2107_v60  ;;  %1764 = vmatpush3.bf16.msra.mxu1 %v1763_v19  ;;  %v1781_v19 = vpack.c.bf16 %v783_v16, %v780_v14  ;;  %v957_v16 = vld [vmem:[#allocation13 + $0x48] sm:$0xff] }
 0x1d0   : > { %1765 = vmatprep.subr.bf16.mxu1 %v2106_v58  ;;  %1739 = vmatprep.subr.bf16.mxu0 %v1738_v32  ;;  %v572_v32 = vrot.slane %v563_v30, %v2277_v59  ;;  %v1792_v22 = vpack.c.bf16 %v957_v16, %v954_v12  ;;  %v970_v30 = vld [vmem:[#allocation13 + $0xb0] sm:$0xff]  ;;  %v995_v16 = vld [vmem:[#allocation13 + $0x178] sm:$0xff] }
 0x1d2   : > { %1741 = vmatpush1.bf16.msra.mxu0 %v1740_v34 }
 0x1d3   : > { %1767 = vmatpush3.bf16.msra.mxu1 %v1766_v28  ;;  %1743 = vmatprep.subr.bf16.mxu0 %v1742_v41  ;;  %v952_v28 = vld [vmem:[#allocation13 + $0x20] sm:$0xff] }
 0x1d4   : > { %1768 = vmatprep.subr.bf16.mxu1 %v2106_v58  ;;  %v1786_v29 = vpack.c.bf16 %v952_v28, %v949_v27  ;;  %v962_v27 = vld [vmem:[#allocation13 + $0x70] sm:$0xff]  ;;  %v965_v28 = vld [vmem:[#allocation13 + $0x88] sm:$0xff] }
 0x1d6   : > { %1745 = vmatpush1.bf16.msra.mxu0 %v1744_v44 }
 0x1d7   : > { %1770 = vmatpush3.bf16.msra.mxu1 %v1769_v37  ;;  %1747 = vmatprep.subr.bf16.mxu0 %v1746_v50 }
 0x1d8   : > { %1771 = vmatprep.subr.bf16.mxu1 %v2106_v58 }
 0x1da   : > { %1749 = vmatpush1.bf16.msra.mxu0 %v1748_v53  ;;  %v514_v53 = vld [vmem:[%s511_s3 + $0x10] sm:$0xff] }
 0x1db   : > { %1773 = vmatpush3.bf16.msra.mxu1 %v1772_v47  ;;  %1751 = vmatprep.subr.bf16.mxu0 %v1750_v63 }
 0x1dc   : > { %1774 = vmatprep.subr.bf16.mxu1 %v2106_v58 }
 0x1de   : > { %1753 = vmatpush1.bf16.msra.mxu0 %v1752_v5 }
 0x1df   : > { %1776 = vmatpush3.bf16.msra.mxu1 %v1775_v56  ;;  %1755 = vmatprep.subr.bf16.mxu0 %v1754_v11  ;;  %v1788_v11 = vpack.c.bf16 %v951_v2, %v948_v61 }
 0x1e0   : > { %1777 = vmatprep.subr.bf16.mxu1 %v2106_v58 }
 0x1e2   : > { %1757 = vmatpush1.bf16.msra.mxu0 %v1756_v15  ;;  %v1790_v15 = vpack.c.bf16 %v958_v8, %v955_v7  ;;  %v989_v7 = vld [vmem:[#allocation13 + $0x148] sm:$0xff]  ;;  %v991_v8 = vld [vmem:[#allocation13 + $0x158] sm:$0xff] }
 0x1e3   : > { %1779 = vmatpush3.bf16.msra.mxu1 %v1778_v10  ;;  %1759 = vmatprep.subr.bf16.mxu0 %v1758_v20  ;;  %v964_v20 = vld [vmem:[#allocation13 + $0x80] sm:$0xff] }
 0x1e4   : > { %1780 = vmatprep.subr.bf16.mxu1 %v2106_v58 }
 0x1e6   : > { %1761 = vmatpush1.bf16.msra.mxu0 %v1760_v25 }
 0x1e7   : > { %1782 = vmatpush3.bf16.msra.mxu1 %v1781_v19  ;;  %1787 = vmatprep.subr.bf16.mxu0 %v1786_v29  ;;  %v961_v19 = vld [vmem:[#allocation13 + $0x68] sm:$0xff]  ;;  %v967_v29 = vld [vmem:[#allocation13 + $0x98] sm:$0xff] }
 0x1e8   : > { %1783 = vmatprep.subr.bf16.mxu1 %v2106_v58  ;;  %v1794_v25 = vpack.c.bf16 %v964_v20, %v961_v19  ;;  %v505_v19 = vld [vmem:[#allocation4] sm:$0xff] }
 0x1eb   : > { %1785 = vmatpush3.bf16.msra.mxu1 %v1784_v26  ;;  %v963_v26 = vld [vmem:[#allocation13 + $0x78] sm:$0xff] }
 0x1ec   : > { %1818 = vmatprep.subr.bf16.mxu1 %v2106_v58 }
 0x228   : > { %v2342_v62 = vpop.permute.xlu0 %1179 }
 0x229   : > { %vm1181_vm2 = vcmp.eq.s32.totalorder %v2342_v62, 1 }
 0x29c   : > { %v646_v34 = vpop.f32.mrb[0].mxu0 }
 0x29d   : > { %v647_v35 = vadd.f32 %v646_v34, %v568_v31  ;;  %v648_v37 = vpop.f32.mrb[1].mxu0  ;;  %v966_v31 = vld [vmem:[#allocation13 + $0x90] sm:$0xff]  ;;  %v969_v34 = vld [vmem:[#allocation13 + $0xa8] sm:$0xff] }
 0x29e   : > { %v649_v38 = vadd.f32 %v648_v37, %v572_v32  ;;  %v1825_v32 = vpack.c.bf16 %v965_v28, %v962_v27  ;;  %v973_v37 = vld [vmem:[#allocation13 + $0xc8] sm:$0xff] }
 0x29f   : > { %v721_v39 = vadd.f32 %v647_v35, %v512_v33  ;;  %v1798_v33 = vpack.c.bf16 %v970_v30, %v967_v29  ;;  %v968_v35 = vld [vmem:[#allocation13 + $0xa0] sm:$0xff] }
 0x2a0   : > { %v728_v41 = vadd.f32 %v649_v38, %v513_v36  ;;  %v971_v36 = vld [vmem:[#allocation13 + $0xb8] sm:$0xff]  ;;  %v976_v38 = vld [vmem:[#allocation13 + $0xe0] sm:$0xff] }
 0x2a1   : > { %v1308_v42 = vmul.f32 -1.442695, %v721_v39  ;;  %v717_v43 = vpop.f32.mrb[0].mxu1  ;;  %v1800_v39 = vpack.c.bf16 %v969_v34, %v966_v31 }
 0x2a2   : > { %v1309_v44 = vmul.f32 -1.442695, %v728_v41  ;;  %v1472_v45 = vpop.f32.mrb[1].mxu1  ;;  %v718_v51 = vadd.f32 %v717_v43, %v576_v48  ;;  %v972_v41 = vld [vmem:[#allocation13 + $0xc0] sm:$0xff]  ;;  %v975_v43 = vld [vmem:[#allocation13 + $0xd8] sm:$0xff] }
 0x2a3   : > { %1901 = vpow2.f32 %v1308_v42  ;;  %v1828_v42 = vpack.c.bf16 %v971_v36, %v968_v35  ;;  %v977_v45 = vld [vmem:[#allocation13 + $0xe8] sm:$0xff]  ;;  %v1804_v48 = vpack.c.bf16 %v975_v43, %v972_v41 }
 0x2a4   : > { %1903 = vpow2.f32 %v1309_v44  ;;  %v974_v44 = vld [vmem:[#allocation13 + $0xd0] sm:$0xff] }
 0x2ad   : > { %v1902_v46 = vpop.eup %1901 }
 0x2ae   : > { %v725_v47 = vadd.f32 1.0, %v1902_v46  ;;  %v1904_v49 = vpop.eup %1903  ;;  %v979_v46 = vld [vmem:[#allocation13 + $0xf8] sm:$0xff] }
 0x2af   : > { %v732_v50 = vadd.f32 1.0, %v1904_v49  ;;  %v978_v49 = vld [vmem:[#allocation13 + $0xf0] sm:$0xff] }
 0x2b0   : > { %1905 = vrcp.f32 %v725_v47  ;;  %v982_v47 = vld [vmem:[#allocation13 + $0x110] sm:$0xff] }
 0x2b1   : > { %1907 = vrcp.f32 %v732_v50  ;;  %v1831_v50 = vpack.c.bf16 %v977_v45, %v974_v44 }
 0x2ba   : > { %v1906_v52 = vpop.eup %1905 }
 0x2bb   : > { %v735_v54 = vmul.f32 %v1906_v52, %v718_v51  ;;  %v1908_v56 = vpop.eup %1907  ;;  %v1806_v51 = vpack.c.bf16 %v982_v47, %v979_v46  ;;  %v981_v52 = vld [vmem:[#allocation13 + $0x108] sm:$0xff] }
 0x2bc   : > { %v738_v63 = vsub.f32 1.0, %v1908_v56  ;;  %v740_v10 = vmul.f32 %v1908_v56, %v2317_v6  ;;  %v988_v56 = vld [vmem:[#allocation13 + $0x140] sm:$0xff]  ;;  %v1808_v61 = vpack.c.bf16 %v981_v52, %v978_v49 }
 0x2bd   : > { %v736_v55 = vadd.f32 %v735_v54, %v514_v53  ;;  %v980_v53 = vld [vmem:[#allocation13 + $0x100] sm:$0xff]  ;;  %v983_v54 = vld [vmem:[#allocation13 + $0x118] sm:$0xff] }
 0x2be   : > { %v1834_v2 = vpack.c.bf16 %v983_v54, %v980_v53  ;;  %v1187_v54 = vld [vmem:[#allocation14] sm:$0xff] (%p500_p6) }
 0x2bf   : > { %1909 = vtanh.f32 %v736_v55  ;;  %v985_v55 = vld [vmem:[#allocation13 + $0x128] sm:$0xff] }
 0x2c0   : > { %v1810_v3 = vpack.c.bf16 %v988_v56, %v985_v55  ;;  %v1188_v55 = vld [vmem:[#allocation14 + $0x8] sm:$0xff] (%p500_p6)  ;;  %v1189_v56 = vld [vmem:[#allocation14 + $0x10] sm:$0xff] (%p500_p6) }
 0x2c9   : > { %v1910_v5 = vpop.eup %1909 }
 0x2ca   : > { %v739_v9 = vmul.f32 %v1910_v5, %v738_v63  ;;  %v984_v63 = vld [vmem:[#allocation13 + $0x120] sm:$0xff]  ;;  %v986_v5 = vld [vmem:[#allocation13 + $0x130] sm:$0xff] }
 0x2cb   : > { %v1837_v12 = vpack.c.bf16 %v989_v7, %v986_v5  ;;  %v1193_v7 = vld [vmem:[#allocation14 + $0x30] sm:$0xff] (%p500_p6) }
 0x2cc   : > { %v741_v14 = vadd.f32 %v740_v10, %v739_v9  ;;  %v994_v9 = vld [vmem:[#allocation13 + $0x170] sm:$0xff]  ;;  %v1812_v10 = vpack.c.bf16 %v987_v4, %v984_v63  ;;  %v1843_v63 = vpack.c.bf16 (%p500_p6), %v1188_v55, %v1187_v54  ;;  %v1192_v4 = vld [vmem:[#allocation14 + $0x28] sm:$0xff] (%p500_p6) }
 0x2ce   : > { %v1182_v21 = vsel %vm1181_vm2, %v741_v14, %v2317_v6  ;;  %872 = vmatmul.mubr.f32.vlgmr.msra.gmra.mrb[2].mxu0 %v741_v14  ;;  %1506 = vmatmul.mubr.f32.vlgmr.msra.gmra.mrb[2].mxu1 %v741_v14  ;;  %v1796_v6 = vpack.c.bf16 %v963_v26, %v960_v23  ;;  %v993_v14 = vld [vmem:[#allocation13 + $0x168] sm:$0xff]  ;;  %v790_v23 = vld [vmem:[%s2400_s8] sm:$0x7] }
 0x2cf   : > { %1183 = vst [vmem:[#allocation3] sm:$0xff] %v1182_v21  ;;  %1789 = vmatpush1.bf16.msra.mxu0 %v1788_v11  ;;  %1820 = vmatpush3.bf16.msra.mxu1 %v1819_v13  ;;  %v990_v11 = vld [vmem:[#allocation13 + $0x150] sm:$0xff]  ;;  %v1814_v13 = vpack.c.bf16 %v994_v9, %v991_v8  ;;  %v803_v41 = vrot.slane %v790_v23, %v2269_v40  ;;  %v1194_v8 = vld [vmem:[#allocation14 + $0x38] sm:$0xff] (%p500_p6) }
 0x2d0   : > { %1791 = vmatprep.subr.bf16.mxu0 %v1790_v15  ;;  %1821 = vmatprep.subr.bf16.mxu1 %v2106_v58  ;;  %v992_v15 = vld [vmem:[#allocation13 + $0x160] sm:$0xff]  ;;  %v1816_v17 = vpack.c.bf16 %v993_v14, %v990_v11  ;;  %v1852_v1 = vpack.c.bf16 (%p500_p6), %v1194_v8, %v1193_v7  ;;  %v1197_v9 = vld [vmem:[#allocation14 + $0x50] sm:$0xff] (%p500_p6) }
 0x2d1   : > { %1077 = vmatprep.mubr.f32.mxu0 %v2107_v60  ;;  %1540 = vmatprep.mubr.msk.f32.mxu1 %vm2108_vm0, %v2107_v60  ;;  %v1802_v60 = vpack.c.bf16 %v976_v38, %v973_v37  ;;  %v1840_v18 = vpack.c.bf16 %v995_v16, %v992_v15  ;;  %v1199_v11 = vld [vmem:[#allocation14 + $0x60] sm:$0xff] (%p500_p6)  ;;  %v1201_v14 = vld [vmem:[#allocation14 + $0x70] sm:$0xff] (%p500_p6)  ;;  %v1202_v15 = vld [vmem:[#allocation14 + $0x78] sm:$0xff] (%p500_p6) }
 0x2d2   :  { %v1864_v16 = vpack.c.bf16 (%p500_p6), %v1202_v15, %v1201_v14 }
 0x2d3   : > { %1793 = vmatpush1.bf16.msra.mxu0 %v1792_v22  ;;  %1823 = vmatpush3.bf16.msra.mxu1 %v1822_v24  ;;  %v996_v22 = vld [vmem:[%s2401_s9] sm:$0x7]  ;;  %v795_v24 = vrot.slane %v790_v23, %v2275_v57  ;;  %s2112_s9 = smov (%p500_p6), [#allocation16]  }
 0x2d4   : > { %1795 = vmatprep.subr.bf16.mxu0 %v1794_v25  ;;  %1824 = vmatprep.subr.bf16.mxu1 %v2106_v58  ;;  %v1001_v25 = vrot.slane %v996_v22, %v2275_v57  ;;  %v1005_v26 = vrot.slane %v996_v22, %v2277_v59  ;;  %v1009_v38 = vrot.slane %v996_v22, %v2269_v40  ;;  %v1195_v40 = vld [vmem:[#allocation14 + $0x40] sm:$0xff] (%p500_p6)  ;;  %v1196_v57 = vld [vmem:[#allocation14 + $0x48] sm:$0xff] (%p500_p6)  ;;  %s1287_s17 = sshll.u32 (%p500_p6), %s2112_s9, 4  ;;  %s1288_s17 = int_to_ptr.vmem [resolvable:$true] %s1287_s17 }
 0x2d5   :  { %s2053_s19 = scalar_lea.vmem (%p500_p6), %s1288_s17, 128  ;;  %p2058_p8 = scmp.lt.s32.totalorder (%p500_p6), %s1288_s17, %s1288_s17 }
 0x2d6   : > { %v1866_v27 = vadd.f32 %v1001_v25, %v795_v24  ;;  %p2054_p7 = scmp.ne.s32.totalorder (%p500_p6), %s1288_s17, %s2053_s19  ;;  %p2059_p9 = scmp.lt.s32.totalorder (%p500_p6), %s2053_s19, %s2053_s19 }
 0x2d7   : > { %1797 = vmatpush1.bf16.msra.mxu0 %v1796_v6  ;;  %1826 = vmatpush3.bf16.msra.mxu1 %v1825_v32 }
 0x2d8   : > { %1799 = vmatprep.subr.bf16.mxu0 %v1798_v33  ;;  %1827 = vmatprep.subr.bf16.mxu1 %v2106_v58  ;;  %p2060_p10 = por (%p500_p6), %p2059_p9, %p2058_p8 }
 0x2da   :  { %p2061_p11 = pnand (%p500_p6), %p2060_p10, %p2054_p7 }
 0x2db   : > { %1801 = vmatpush1.bf16.msra.mxu0 %v1800_v39  ;;  %1829 = vmatpush3.bf16.msra.mxu1 %v1828_v42 }
 0x2dc   : > { %1803 = vmatprep.subr.bf16.mxu0 %v1802_v60  ;;  %1830 = vmatprep.subr.bf16.mxu1 %v2106_v58 }
 0x2df   : > { %1805 = vmatpush1.bf16.msra.mxu0 %v1804_v48  ;;  %1832 = vmatpush3.bf16.msra.mxu1 %v1831_v50 }
 0x2e0   : > { %1807 = vmatprep.subr.bf16.mxu0 %v1806_v51  ;;  %1833 = vmatprep.subr.bf16.mxu1 %v2106_v58 }
 0x2e3   : > { %1809 = vmatpush1.bf16.msra.mxu0 %v1808_v61  ;;  %1835 = vmatpush3.bf16.msra.mxu1 %v1834_v2  ;;  %v2110_v61 = vmov (%p500_p6), 0.0|0.0   ;;  %v1190_v2 = vld [vmem:[#allocation14 + $0x18] sm:$0xff] (%p500_p6) }
 0x2e4   : > { %1811 = vmatprep.subr.bf16.mxu0 %v1810_v3  ;;  %1836 = vmatprep.subr.bf16.mxu1 %v2106_v58  ;;  %v1846_v62 = vpack.c.bf16 (%p500_p6), %v1190_v2, %v1189_v56  ;;  %v1191_v3 = vld [vmem:[#allocation14 + $0x20] sm:$0xff] (%p500_p6) }
 0x2e5   :  { %v1849_v5 = vpack.c.bf16 (%p500_p6), %v1192_v4, %v1191_v3 }
 0x2e7   : > { %1813 = vmatpush1.bf16.msra.mxu0 %v1812_v10  ;;  %1838 = vmatpush3.bf16.msra.mxu1 %v1837_v12  ;;  %v1200_v12 = vld [vmem:[#allocation14 + $0x68] sm:$0xff] (%p500_p6) }
 0x2e8   : > { %1815 = vmatprep.subr.bf16.mxu0 %v1814_v13  ;;  %1839 = vmatprep.subr.bf16.mxu1 %v2106_v58  ;;  %v799_v58 = vrot.slane %v790_v23, %v2277_v59  ;;  %v1855_v59 = vpack.c.bf16 (%p500_p6), %v1196_v57, %v1195_v40  ;;  %v1861_v13 = vpack.c.bf16 (%p500_p6), %v1200_v12, %v1199_v11 }
 0x2ea   : > { %v1868_v29 = vadd.f32 %v1005_v26, %v799_v58 }
 0x2eb   : > { %1817 = vmatpush1.bf16.msra.mxu0 %v1816_v17  ;;  %1841 = vmatpush3.bf16.msra.mxu1 %v1840_v18  ;;  %v1312_v18 = vld [vmem:[%s2403_s11] ss:$0 sm:$0xff] (%p500_p6) }
 0x2ec   :  { %1842 = vmatprep.subr.bf16.mxu0 (%p500_p6), %v2110_v61 }
 0x2ee   : > { %1078 = vmatmul.mubr.f32.vlgmr.msra.gmra.mrb[2].mxu0 %v505_v19  ;;  %1541 = vmatmul.mubr.f32.vlgmr.msra.gmra.mrb[4].mxu1 %v505_v19 }
 0x2ef   :  { %1575 = vmatprep.mubr.msk.f32.mxu0 (%p500_p6), %vm2111_vm3, %v2105_v0  ;;  %1844 = vmatpush3.bf16.msra.mxu0 (%p500_p6), %v1843_v63  ;;  %v1198_v0 = vld [vmem:[#allocation14 + $0x58] sm:$0xff] (%p500_p6) }
 0x2f0   :  { %1845 = vmatprep.subr.bf16.mxu0 (%p500_p6), %v2110_v61  ;;  %v1858_v10 = vpack.c.bf16 (%p500_p6), %v1198_v0, %v1197_v9 }
 0x2f3   :  { %1847 = vmatpush3.bf16.msra.mxu0 (%p500_p6), %v1846_v62 }
 0x2f4   :  { %1848 = vmatprep.subr.bf16.mxu0 (%p500_p6), %v2110_v61 }
 0x2f7   :  { %1850 = vmatpush3.bf16.msra.mxu0 (%p500_p6), %v1849_v5 }
 0x2f8   :  { %1851 = vmatprep.subr.bf16.mxu0 (%p500_p6), %v2110_v61 }
 0x2fb   :  { %1853 = vmatpush3.bf16.msra.mxu0 (%p500_p6), %v1852_v1 }
 0x2fc   :  { %1854 = vmatprep.subr.bf16.mxu0 (%p500_p6), %v2110_v61 }
 0x2ff   :  { %1856 = vmatpush3.bf16.msra.mxu0 (%p500_p6), %v1855_v59 }
 0x300   :  { %1857 = vmatprep.subr.bf16.mxu0 (%p500_p6), %v2110_v61 }
 0x303   :  { %1859 = vmatpush3.bf16.msra.mxu0 (%p500_p6), %v1858_v10 }
 0x304   :  { %1860 = vmatprep.subr.bf16.mxu0 (%p500_p6), %v2110_v61 }
 0x307   :  { %1862 = vmatpush3.bf16.msra.mxu0 (%p500_p6), %v1861_v13 }
 0x308   :  { %1863 = vmatprep.subr.bf16.mxu0 (%p500_p6), %v2110_v61 }
 0x30b   :  { %1865 = vmatpush3.bf16.msra.mxu0 (%p500_p6), %v1864_v16 }
 0x3a1   : > { %v944_v20 = vpop.f32.mrb[2].mxu1 }
 0x3a2   : > { %v1507_v21 = vpop.f32.mrb[3].mxu1  ;;  %v945_v44 = vadd.f32 %v944_v20, %v803_v41 }
 0x3c1   : > { %v1079_v28 = vpop.f32.mrb[2].mxu0  ;;  %v1150_v30 = vpop.f32.mrb[4].mxu1 }
 0x3c2   : > { %v1867_v6 = vadd.f32 %v1866_v27, %v1079_v28  ;;  %v1081_v31 = vpop.f32.mrb[3].mxu0  ;;  %v1542_v32 = vpop.f32.mrb[5].mxu1  ;;  %v1151_v60 = vadd.f32 %v1150_v30, %v1009_v38 }
 0x3c3   : > { %v1869_v34 = vadd.f32 %v1868_v29, %v1081_v31 }
 0x3c4   : > { %v1310_v33 = vmul.f32 -1.442695, %v1867_v6 }
 0x3c5   : > { %v1311_v35 = vmul.f32 -1.442695, %v1869_v34 }
 0x3c6   : > { %1911 = vpow2.f32 %v1310_v33 }
 0x3c7   : > { %1913 = vpow2.f32 %v1311_v35 }
 0x3d0   : > { %v1912_v36 = vpop.eup %1911 }
 0x3d1   : > { %v1158_v37 = vadd.f32 1.0, %v1912_v36  ;;  %v1914_v39 = vpop.eup %1913 }
 0x3d2   : > { %v1165_v42 = vadd.f32 1.0, %v1914_v39 }
 0x3d3   : > { %1915 = vrcp.f32 %v1158_v37 }
 0x3d4   : > { %1917 = vrcp.f32 %v1165_v42 }
 0x3dd   : > { %v1916_v43 = vpop.eup %1915 }
 0x3de   : > { %v1168_v45 = vmul.f32 %v1916_v43, %v1151_v60  ;;  %v1918_v47 = vpop.eup %1917 }
 0x3df   : > { %v1171_v48 = vsub.f32 1.0, %v1918_v47  ;;  %v1173_v50 = vmul.f32 %v1918_v47, %v505_v19 }
 0x3e0   : > { %v1169_v46 = vadd.f32 %v1168_v45, %v945_v44 }
 0x3e2   : > { %1919 = vtanh.f32 %v1169_v46 }
 0x3ec   : > { %v1920_v49 = vpop.eup %1919  ;;  %502 = sbr.rel (!%p500_p6) target bundleno = 422 (0x1a6), region = 100 }
 0x3ed   : > { %v1172_v51 = vmul.f32 %v1920_v49, %v1171_v48 }
 0x3ef   : > { %v1174_v52 = vadd.f32 %v1173_v50, %v1172_v51 }
 0x3f1   : > { %v1184_v53 = vsel %vm1181_vm2, %v1174_v52, %v505_v19 }
 0x3f2   : > { %1185 = vst [vmem:[#allocation4] sm:$0xff] %v1184_v53 }
 0x3f9   :  { %v1186_v17 = vld [vmem:[#allocation4] sm:$0xff] }
 0x3fa   :  { %1576 = vmatmul.mubr.f32.vlgmr.msra.gmra.mrb[0].mxu0 %v1186_v17 }
 0x4cd   :  { %v1276_v19 = vpop.f32.mrb[0].mxu0 }
 0x4ce   :  { %v1277_v20 = vadd.f32 %v1312_v18, %v1276_v19  ;;  %v1577_v21 = vpop.f32.mrb[1].mxu0 }
 0x4d0   :  { %1280 = vst [vmem:[#allocation16] sm:$0xff] %v1277_v20 }
 0x4d1   :  { %2064 = shalt.err (!%p2061_p11)
}
 0x4d2   :  { %s2065_s20 = scalar_lea.hbm %s2404_s12, 128 }
 0x4d3   :  { %p2066_p12 = scmp.ne.s32.totalorder %s2404_s12, %s2065_s20  ;;  %p2069_p13 = scmp.lt.u32.totalorder %s2065_s20, %s2404_s12 }
 0x4d5   :  { %p2071_p0 = pnand %p2069_p13, %p2066_p12 }
 0x4d7   :  { %2074 = shalt.err (!%p2071_p0)
}
 0x4d8   :  { %1290 = dma.vmem_to_hbm [thread:$0]  %s1288_s17, 128, %s2404_s12, [#allocation7]  }
 0x4d9   :  { %2087 = dma.done.wait [#allocation7], 128  }
 0x4da   :  { %2088 = vsyncadd [#allocation7], 4294967168 }
 0x4db   :  { %1294 = vsyncpa [#allocation6], 1 }
 0x4dc   :  { %1295 = vsyncpa [#allocation9], 1 }
 0x4dd   :  { %1296 = vsyncpa [#allocation12], 1 }
 0x4de   :  { %1297 = vsyncpa [#allocation15], 1 }
 0x4df   :  { %1298 = vsyncpa [#allocation7], 1 }

</bundles_post_ra>
